<compile_context>
chip_gen: v7x
topology: tpu7x:2x2x1
jax: 0.10.0
libtpu: 0.0.40
codegen_flags: <defaults>
</compile_context>

<pallas_src>
import functools
import math

import jax
import jax.numpy as jnp
from jax import lax
from jax.experimental import pallas as pl
from jax.experimental.pallas import tpu as pltpu


def _round_up(x, m):
    return ((x + m - 1) // m) * m


def _supcon_kernel(lab_row_ref, lab_col_ref, q_ref, k_ref, o_ref,
                   m_sc, l_sc, psum_sc, pcnt_sc,
                   *, inv_temp, n_valid, block_m, block_n):
    """One (row-block, col-block) step of the streaming SupCon statistics.

    lab_row_ref: [TM, 1] int32  anchor labels (padded rows hold a sentinel)
    lab_col_ref: [1, TN] int32  contrast labels (padded cols hold a sentinel)
    q_ref:       [TM, D] bf16   anchor feature tile (resident across col blocks)
    k_ref:       [TN, D] bf16   contrast feature tile (streamed)
    o_ref:       [TM, 1] f32    per-anchor mean log-prob over positives
    scratch (each [TM,1] f32): running max, running masked exp-sum,
                               positive-logit sum, positive count.
    """
    i = pl.program_id(0)
    j = pl.program_id(1)

    @pl.when(j == 0)
    def _():
        m_sc[...] = jnp.full_like(m_sc, -jnp.inf)
        l_sc[...] = jnp.zeros_like(l_sc)
        psum_sc[...] = jnp.zeros_like(psum_sc)
        pcnt_sc[...] = jnp.zeros_like(pcnt_sc)

    # Scores: bf16 MXU matmul contracting the feature dim of both operands
    # (no [D, TN] transpose materialized), scaled by 1/temperature in f32.
    s = lax.dot_general(q_ref[...], k_ref[...],
                        (((1,), (1,)), ((), ())),
                        preferred_element_type=jnp.float32) * inv_temp

    # logits_mask: exclude self-contrast diagonal and zero-padded columns.
    row_ids = i * block_m + lax.broadcasted_iota(jnp.int32, s.shape, 0)
    col_ids = j * block_n + lax.broadcasted_iota(jnp.int32, s.shape, 1)
    valid = (row_ids != col_ids) & (col_ids < n_valid)

    # Positive-pair mask rebuilt from labels (no [N, N] mask in HBM/VMEM).
    pos = (lab_row_ref[...] == lab_col_ref[...]) & valid

    # Online (flash) softmax denominator over the masked columns.
    s_valid = jnp.where(valid, s, -jnp.inf)
    m_prev = m_sc[...]
    m_new = jnp.maximum(m_prev, jnp.max(s_valid, axis=1, keepdims=True))
    alpha = jnp.exp(m_prev - m_new)
    e = jnp.exp(s_valid - m_new)                      # exp(-inf) -> 0 at masked entries
    l_sc[...] = alpha * l_sc[...] + jnp.sum(e, axis=1, keepdims=True)
    m_sc[...] = m_new

    # Positive-pair accumulators (raw logits; avoids 0 * inf).
    psum_sc[...] += jnp.sum(jnp.where(pos, s, 0.0), axis=1, keepdims=True)
    pcnt_sc[...] += jnp.sum(pos.astype(jnp.float32), axis=1, keepdims=True)

    @pl.when(j == pl.num_programs(1) - 1)
    def _():
        lse = m_sc[...] + jnp.log(l_sc[...])
        cnt = pcnt_sc[...]
        mean_pos = psum_sc[...] / jnp.maximum(cnt, 1.0)
        # Anchors with no positive pair contribute 0 (PyTorch would emit NaN here).
        o_ref[...] = jnp.where(cnt > 0.0, mean_pos - lse, 0.0)


def supcon_loss(features, labels=None, mask=None, *,
                temperature=0.5, contrast_mode='all', base_temperature=0.07,
                block_m=None, block_n=None):
    """JAX/Pallas equivalent of SupConLoss.forward (contrast_mode='all').

    features: [batch, n_views, feature_dim] (extra trailing dims are flattened).
    labels:   optional [batch] int labels (supervised SupCon).
    """
    if features.ndim < 3:
        raise ValueError('`features` must have at least 3 dimensions.')
    if features.ndim > 3:
        features = features.reshape(features.shape[0], features.shape[1], -1)
    b, v, d = features.shape

    if labels is not None and mask is not None:
        raise ValueError('Cannot define both `labels` and `mask`.')
    if contrast_mode != 'all':
        # TODO(synk): contrast_mode='one' (single-anchor) path not implemented.
        raise NotImplementedError("only contrast_mode='all' is implemented")
    if mask is not None:
        # TODO(synk): arbitrary [b, b] mask input would require materializing the
        # tiled [N, N] mask; only the labels / SimCLR (eye) paths are kernelized.
        raise NotImplementedError('explicit `mask` input is not implemented')

    if labels is None:
        lab = jnp.arange(b, dtype=jnp.int32)             # SimCLR: each sample = own class
    else:
        lab = jnp.asarray(labels, dtype=jnp.int32).reshape(-1)
        if lab.shape[0] != b:
            raise ValueError('The number of labels must match the number of features.')

    n = v * b
    # contrast_features = torch.cat(torch.unbind(features, 1), 0): view-major flatten.
    contrast = jnp.transpose(features, (1, 0, 2)).reshape(n, d)
    lab_n = jnp.tile(lab, v)                             # label of row p is labels[p % b]

    # TPU-friendly padding: lanes (D) to 128, rows (N) to the tile sizes.
    d_p = _round_up(d, 128)
    base = _round_up(n, 128)
    if block_n is None:
        block_n = next(t for t in (512, 256, 128) if base % t == 0)
    if block_m is None:
        block_m = next(t for t in (256, 128) if base % t == 0)
    n_p = _round_up(n, math.lcm(block_m, block_n))

    z = jnp.zeros((n_p, d_p), jnp.bfloat16).at[:n, :d].set(contrast.astype(jnp.bfloat16))
    int_min = jnp.iinfo(jnp.int32).min
    lab_row = jnp.full((n_p, 1), int_min + 1, jnp.int32).at[:n, 0].set(lab_n)
    lab_col = jnp.full((1, n_p), int_min, jnp.int32).at[0, :n].set(lab_n)

    grid = (n_p // block_m, n_p // block_n)
    kernel = functools.partial(_supcon_kernel,
                               inv_temp=1.0 / temperature,
                               n_valid=n, block_m=block_m, block_n=block_n)

    mlpp = pl.pallas_call(
        kernel,
        out_shape=jax.ShapeDtypeStruct((n_p, 1), jnp.float32),
        grid_spec=pltpu.PrefetchScalarGridSpec(
            num_scalar_prefetch=0,
            grid=grid,
            in_specs=[
                pl.BlockSpec((block_m, 1), lambda i, j: (i, 0)),    # anchor labels
                pl.BlockSpec((1, block_n), lambda i, j: (0, j)),    # contrast labels
                pl.BlockSpec((block_m, d_p), lambda i, j: (i, 0)),  # anchor tile (resident)
                pl.BlockSpec((block_n, d_p), lambda i, j: (j, 0)),  # contrast tile (streamed)
            ],
            out_specs=pl.BlockSpec((block_m, 1), lambda i, j: (i, 0)),
            scratch_shapes=[pltpu.VMEM((block_m, 1), jnp.float32)] * 4,
        ),
        compiler_params=pltpu.CompilerParams(
            dimension_semantics=("parallel", "arbitrary")),
    )(lab_row, lab_col, z, z)

    mean_log_prob_pos = mlpp[:n, 0]
    # loss = -(T / base_T) * mean over all N anchors (== .view(v, b).mean()).
    return -(temperature / base_temperature) * jnp.mean(mean_log_prob_pos)


def _reference_supcon(features, labels=None, *, temperature=0.5, base_temperature=0.07):
    """Pure-JAX reference mirroring the PyTorch forward (f32 math; bf16 matmul
    inputs to match the kernel's MXU precision)."""
    b, v, d = features.shape
    n = v * b
    z = jnp.transpose(features, (1, 0, 2)).reshape(n, d)
    zb = z.astype(jnp.bfloat16).astype(jnp.float32)
    logits = (zb @ zb.T) / temperature
    logits = logits - jnp.max(logits, axis=1, keepdims=True)
    if labels is None:
        mask_bb = jnp.eye(b, dtype=jnp.float32)
    else:
        lab = jnp.asarray(labels).reshape(-1, 1)
        mask_bb = (lab == lab.T).astype(jnp.float32)
    logits_mask = 1.0 - jnp.eye(n, dtype=jnp.float32)
    mask = jnp.tile(mask_bb, (v, v)) * logits_mask
    exp_logits = jnp.exp(logits) * logits_mask
    log_prob = logits - jnp.log(jnp.sum(exp_logits, axis=1, keepdims=True))
    mlpp = jnp.sum(mask * log_prob, axis=1) / jnp.sum(mask, axis=1)
    return -(temperature / base_temperature) * jnp.mean(mlpp)


if __name__ == "__main__":
    key = jax.random.PRNGKey(0)
    k1, k2, k3 = jax.random.split(key, 3)

    # Case 1: SimCLR (no labels), small shapes, single-block grid.
    batch, n_views, feat_dim = 8, 2, 32
    feats = jax.random.normal(k1, (batch, n_views, feat_dim), jnp.float32)
    feats = feats / jnp.linalg.norm(feats, axis=-1, keepdims=True)
    loss = jax.block_until_ready(
        supcon_loss(feats, temperature=0.5, base_temperature=0.07))
    ref = _reference_supcon(feats, temperature=0.5, base_temperature=0.07)
    assert jnp.allclose(loss, ref, rtol=1e-4, atol=1e-4), (loss, ref)

    # Case 2: supervised labels, padded N and D, multi-block grid + online softmax.
    batch2, n_views2, feat_dim2 = 100, 2, 48
    feats2 = jax.random.normal(k2, (batch2, n_views2, feat_dim2), jnp.float32)
    feats2 = feats2 / jnp.linalg.norm(feats2, axis=-1, keepdims=True)
    labels2 = jax.random.randint(k3, (batch2,), 0, 10)
    loss2 = jax.block_until_ready(
        supcon_loss(feats2, labels=labels2, temperature=0.5, base_temperature=0.07,
                    block_m=128, block_n=128))
    ref2 = _reference_supcon(feats2, labels2, temperature=0.5, base_temperature=0.07)
    assert jnp.allclose(loss2, ref2, rtol=1e-4, atol=1e-4), (loss2, ref2)

    print("KERNEL_OK")
</pallas_src>

<mosaic_0001>
module attributes {stable_mosaic.version = 11 : i64} {
  func.func @_supcon_kernel(%arg0: i32, %arg1: i32, %arg2: memref<128x1xi32, #tpu.memory_space<vmem>>, %arg3: memref<1x128xi32, #tpu.memory_space<vmem>>, %arg4: memref<128x128xbf16, #tpu.memory_space<vmem>>, %arg5: memref<128x128xbf16, #tpu.memory_space<vmem>>, %arg6: memref<128x1xf32, #tpu.memory_space<vmem>>, %arg7: memref<128x1xf32, #tpu.memory_space<vmem>>, %arg8: memref<128x1xf32, #tpu.memory_space<vmem>>, %arg9: memref<128x1xf32, #tpu.memory_space<vmem>>, %arg10: memref<128x1xf32, #tpu.memory_space<vmem>>) attributes {dimension_semantics = [#tpu.dimension_semantics<parallel>, #tpu.dimension_semantics<arbitrary>], iteration_bounds = array<i64: 1, 1>, scalar_prefetch = 0 : i64, scratch_operands = 4 : i64, tpu.core_type = #tpu.core_type<tc>, window_params = [{transform_indices = @transform_0, window_bounds = array<i64: 128, 1>}, {transform_indices = @transform_1, window_bounds = array<i64: 1, 128>}, {transform_indices = @transform_2, window_bounds = array<i64: 128, 128>}, {transform_indices = @transform_3, window_bounds = array<i64: 128, 128>}, {transform_indices = @transform_4, window_bounds = array<i64: 128, 1>}]} {
    %c0_i32 = arith.constant 0 : i32
    %0 = arith.cmpi eq, %arg1, %c0_i32 : i32
    %1 = arith.extui %0 : i1 to i32
    %c0_i32_0 = arith.constant 0 : i32
    %2 = arith.cmpi ne, %1, %c0_i32_0 : i32
    scf.if %2 {
      %cst_34 = arith.constant 0xFF800000 : f32
      %61 = vector.broadcast %cst_34 : f32 to vector<128x1xf32>
      %c0_35 = arith.constant 0 : index
      %c0_36 = arith.constant 0 : index
      %62 = vector.load %arg7[%c0_35, %c0_36] : memref<128x1xf32, #tpu.memory_space<vmem>>, vector<128x1xf32>
      tpu.vector_store %arg7[%c0_35, %c0_36], %61 {strides = array<i32>} : memref<128x1xf32, #tpu.memory_space<vmem>>, vector<128x1xf32>,
      %cst_37 = arith.constant 0.000000e+00 : f32
      %63 = vector.broadcast %cst_37 : f32 to vector<128x1xf32>
      %c0_38 = arith.constant 0 : index
      %c0_39 = arith.constant 0 : index
      %64 = vector.load %arg8[%c0_38, %c0_39] : memref<128x1xf32, #tpu.memory_space<vmem>>, vector<128x1xf32>
      tpu.vector_store %arg8[%c0_38, %c0_39], %63 {strides = array<i32>} : memref<128x1xf32, #tpu.memory_space<vmem>>, vector<128x1xf32>,
      %cst_40 = arith.constant 0.000000e+00 : f32
      %65 = vector.broadcast %cst_40 : f32 to vector<128x1xf32>
      %c0_41 = arith.constant 0 : index
      %c0_42 = arith.constant 0 : index
      %66 = vector.load %arg9[%c0_41, %c0_42] : memref<128x1xf32, #tpu.memory_space<vmem>>, vector<128x1xf32>
      tpu.vector_store %arg9[%c0_41, %c0_42], %65 {strides = array<i32>} : memref<128x1xf32, #tpu.memory_space<vmem>>, vector<128x1xf32>,
      %cst_43 = arith.constant 0.000000e+00 : f32
      %67 = vector.broadcast %cst_43 : f32 to vector<128x1xf32>
      %c0_44 = arith.constant 0 : index
      %c0_45 = arith.constant 0 : index
      %68 = vector.load %arg10[%c0_44, %c0_45] : memref<128x1xf32, #tpu.memory_space<vmem>>, vector<128x1xf32>
      tpu.vector_store %arg10[%c0_44, %c0_45], %67 {strides = array<i32>} : memref<128x1xf32, #tpu.memory_space<vmem>>, vector<128x1xf32>,
    } else {
    }
    %c0 = arith.constant 0 : index
    %c0_1 = arith.constant 0 : index
    %3 = vector.load %arg4[%c0, %c0_1] : memref<128x128xbf16, #tpu.memory_space<vmem>>, vector<128x128xbf16>
    %c0_2 = arith.constant 0 : index
    %c0_3 = arith.constant 0 : index
    %4 = vector.load %arg5[%c0_2, %c0_3] : memref<128x128xbf16, #tpu.memory_space<vmem>>, vector<128x128xbf16>
    %cst = arith.constant dense<0.000000e+00> : vector<128x128xf32>
    %5 = tpu.matmul %3, %4, %cst {dimension_numbers = #tpu.dot_dimension_numbers<[1], [1], [0], [0], [0, 0, 1, 0], [], []>} : vector<128x128xbf16>, vector<128x128xbf16>, vector<128x128xf32> -> vector<128x128xf32>
    %cst_4 = arith.constant 2.000000e+00 : f32
    %6 = vector.broadcast %cst_4 : f32 to vector<128x128xf32>
    %7 = arith.mulf %5, %6 : vector<128x128xf32>
    %c128_i32 = arith.constant 128 : i32
    %8 = arith.muli %arg0, %c128_i32 : i32
    %9 = tpu.iota {dimensions = array<i32: 0>} : vector<128x128xi32>
    %10 = vector.broadcast %8 : i32 to vector<128x128xi32>
    %11 = arith.addi %10, %9 : vector<128x128xi32>
    %c128_i32_5 = arith.constant 128 : i32
    %12 = arith.muli %arg1, %c128_i32_5 : i32
    %13 = tpu.iota {dimensions = array<i32: 1>} : vector<128x128xi32>
    %14 = vector.broadcast %12 : i32 to vector<128x128xi32>
    %15 = arith.addi %14, %13 : vector<128x128xi32>
    %16 = arith.cmpi ne, %11, %15 : vector<128x128xi32>
    %c16_i32 = arith.constant 16 : i32
    %17 = vector.broadcast %c16_i32 : i32 to vector<128x128xi32>
    %18 = arith.cmpi slt, %15, %17 : vector<128x128xi32>
    %19 = arith.andi %16, %18 : vector<128x128xi1>
    %c0_6 = arith.constant 0 : index
    %c0_7 = arith.constant 0 : index
    %20 = vector.load %arg2[%c0_6, %c0_7] : memref<128x1xi32, #tpu.memory_space<vmem>>, vector<128x1xi32>
    %c0_8 = arith.constant 0 : index
    %c0_9 = arith.constant 0 : index
    %21 = vector.load %arg3[%c0_8, %c0_9] : memref<1x128xi32, #tpu.memory_space<vmem>>, vector<1x128xi32>
    %22 = vector.broadcast %20 : vector<128x1xi32> to vector<128x128xi32>
    %23 = vector.broadcast %21 : vector<1x128xi32> to vector<128x128xi32>
    %24 = arith.cmpi eq, %22, %23 : vector<128x128xi32>
    %25 = arith.andi %24, %19 : vector<128x128xi1>
    %cst_10 = arith.constant 0xFF800000 : f32
    %26 = vector.broadcast %cst_10 : f32 to vector<128x128xf32>
    %27 = arith.select %19, %7, %26 : vector<128x128xi1>, vector<128x128xf32>
    %c0_11 = arith.constant 0 : index
    %c0_12 = arith.constant 0 : index
    %28 = vector.load %arg7[%c0_11, %c0_12] : memref<128x1xf32, #tpu.memory_space<vmem>>, vector<128x1xf32>
    %cst_13 = arith.constant dense<0xFF800000> : vector<128xf32>
    %29 = vector.multi_reduction <maximumf>, %27, %cst_13 [1] : vector<128x128xf32> to vector<128xf32>
    %30 = vector.shape_cast %29 : vector<128xf32> to vector<128x1xf32>
    %31 = arith.maximumf %28, %30 : vector<128x1xf32>
    %32 = arith.subf %28, %31 : vector<128x1xf32>
    %33 = math.exp %32 : vector<128x1xf32>
    %34 = vector.broadcast %31 : vector<128x1xf32> to vector<128x128xf32>
    %35 = arith.subf %27, %34 : vector<128x128xf32>
    %36 = math.exp %35 : vector<128x128xf32>
    %c0_14 = arith.constant 0 : index
    %c0_15 = arith.constant 0 : index
    %37 = vector.load %arg8[%c0_14, %c0_15] : memref<128x1xf32, #tpu.memory_space<vmem>>, vector<128x1xf32>
    %38 = arith.mulf %33, %37 : vector<128x1xf32>
    %cst_16 = arith.constant dense<0.000000e+00> : vector<128xf32>
    %39 = vector.multi_reduction <add>, %36, %cst_16 [1] : vector<128x128xf32> to vector<128xf32>
    %40 = vector.shape_cast %39 : vector<128xf32> to vector<128x1xf32>
    %41 = arith.addf %38, %40 : vector<128x1xf32>
    %c0_17 = arith.constant 0 : index
    %c0_18 = arith.constant 0 : index
    %42 = vector.load %arg8[%c0_17, %c0_18] : memref<128x1xf32, #tpu.memory_space<vmem>>, vector<128x1xf32>
    tpu.vector_store %arg8[%c0_17, %c0_18], %41 {strides = array<i32>} : memref<128x1xf32, #tpu.memory_space<vmem>>, vector<128x1xf32>,
    %c0_19 = arith.constant 0 : index
    %c0_20 = arith.constant 0 : index
    %43 = vector.load %arg7[%c0_19, %c0_20] : memref<128x1xf32, #tpu.memory_space<vmem>>, vector<128x1xf32>
    tpu.vector_store %arg7[%c0_19, %c0_20], %31 {strides = array<i32>} : memref<128x1xf32, #tpu.memory_space<vmem>>, vector<128x1xf32>,
    %c0_21 = arith.constant 0 : index
    %c0_22 = arith.constant 0 : index
    %44 = vector.load %arg9[%c0_21, %c0_22] : memref<128x1xf32, #tpu.memory_space<vmem>>, vector<128x1xf32>
    %cst_23 = arith.constant 0.000000e+00 : f32
    %45 = vector.broadcast %cst_23 : f32 to vector<128x128xf32>
    %46 = arith.select %25, %7, %45 : vector<128x128xi1>, vector<128x128xf32>
    %cst_24 = arith.constant dense<0.000000e+00> : vector<128xf32>
    %47 = vector.multi_reduction <add>, %46, %cst_24 [1] : vector<128x128xf32> to vector<128xf32>
    %48 = vector.shape_cast %47 : vector<128xf32> to vector<128x1xf32>
    %49 = arith.addf %44, %48 : vector<128x1xf32>
    %c0_25 = arith.constant 0 : index
    %c0_26 = arith.constant 0 : index
    %50 = vector.load %arg9[%c0_25, %c0_26] : memref<128x1xf32, #tpu.memory_space<vmem>>, vector<128x1xf32>
    tpu.vector_store %arg9[%c0_25, %c0_26], %49 {strides = array<i32>} : memref<128x1xf32, #tpu.memory_space<vmem>>, vector<128x1xf32>,
    %c0_27 = arith.constant 0 : index
    %c0_28 = arith.constant 0 : index
    %51 = vector.load %arg10[%c0_27, %c0_28] : memref<128x1xf32, #tpu.memory_space<vmem>>, vector<128x1xf32>
    %52 = arith.extui %25 : vector<128x128xi1> to vector<128x128xi32>
    %53 = arith.sitofp %52 : vector<128x128xi32> to vector<128x128xf32>
    %cst_29 = arith.constant dense<0.000000e+00> : vector<128xf32>
    %54 = vector.multi_reduction <add>, %53, %cst_29 [1] : vector<128x128xf32> to vector<128xf32>
    %55 = vector.shape_cast %54 : vector<128xf32> to vector<128x1xf32>
    %56 = arith.addf %51, %55 : vector<128x1xf32>
    %c0_30 = arith.constant 0 : index
    %c0_31 = arith.constant 0 : index
    %57 = vector.load %arg10[%c0_30, %c0_31] : memref<128x1xf32, #tpu.memory_space<vmem>>, vector<128x1xf32>
    tpu.vector_store %arg10[%c0_30, %c0_31], %56 {strides = array<i32>} : memref<128x1xf32, #tpu.memory_space<vmem>>, vector<128x1xf32>,
    %c0_i32_32 = arith.constant 0 : i32
    %58 = arith.cmpi eq, %arg1, %c0_i32_32 : i32
    %59 = arith.extui %58 : i1 to i32
    %c0_i32_33 = arith.constant 0 : i32
    %60 = arith.cmpi ne, %59, %c0_i32_33 : i32
    scf.if %60 {
      %c0_34 = arith.constant 0 : index
      %c0_35 = arith.constant 0 : index
      %61 = vector.load %arg7[%c0_34, %c0_35] : memref<128x1xf32, #tpu.memory_space<vmem>>, vector<128x1xf32>
      %c0_36 = arith.constant 0 : index
      %c0_37 = arith.constant 0 : index
      %62 = vector.load %arg8[%c0_36, %c0_37] : memref<128x1xf32, #tpu.memory_space<vmem>>, vector<128x1xf32>
      %63 = math.log %62 : vector<128x1xf32>
      %64 = arith.addf %61, %63 : vector<128x1xf32>
      %c0_38 = arith.constant 0 : index
      %c0_39 = arith.constant 0 : index
      %65 = vector.load %arg10[%c0_38, %c0_39] : memref<128x1xf32, #tpu.memory_space<vmem>>, vector<128x1xf32>
      %c0_40 = arith.constant 0 : index
      %c0_41 = arith.constant 0 : index
      %66 = vector.load %arg9[%c0_40, %c0_41] : memref<128x1xf32, #tpu.memory_space<vmem>>, vector<128x1xf32>
      %cst_42 = arith.constant 1.000000e+00 : f32
      %67 = vector.broadcast %cst_42 : f32 to vector<128x1xf32>
      %68 = arith.maximumf %65, %67 : vector<128x1xf32>
      %69 = arith.divf %66, %68 : vector<128x1xf32>
      %cst_43 = arith.constant 0.000000e+00 : f32
      %70 = vector.broadcast %cst_43 : f32 to vector<128x1xf32>
      %71 = arith.cmpf ogt, %65, %70 : vector<128x1xf32>
      %72 = arith.subf %69, %64 : vector<128x1xf32>
      %cst_44 = arith.constant 0.000000e+00 : f32
      %73 = vector.broadcast %cst_44 : f32 to vector<128x1xf32>
      %74 = arith.select %71, %72, %73 : vector<128x1xi1>, vector<128x1xf32>
      %c0_45 = arith.constant 0 : index
      %c0_46 = arith.constant 0 : index
      %75 = vector.load %arg6[%c0_45, %c0_46] : memref<128x1xf32, #tpu.memory_space<vmem>>, vector<128x1xf32>
      tpu.vector_store %arg6[%c0_45, %c0_46], %74 {strides = array<i32>} : memref<128x1xf32, #tpu.memory_space<vmem>>, vector<128x1xf32>,
    } else {
    }
    return
  }
  func.func @transform_0(%arg0: i32, %arg1: i32) -> (i32, i32) {
    %c0_i32 = arith.constant 0 : i32
    %c0_i32_0 = arith.constant 0 : i32
    return %arg0, %c0_i32 : i32, i32
  }
  func.func @transform_1(%arg0: i32, %arg1: i32) -> (i32, i32) {
    %c0_i32 = arith.constant 0 : i32
    %c0_i32_0 = arith.constant 0 : i32
    return %c0_i32, %arg1 : i32, i32
  }
  func.func @transform_2(%arg0: i32, %arg1: i32) -> (i32, i32) {
    %c0_i32 = arith.constant 0 : i32
    %c0_i32_0 = arith.constant 0 : i32
    return %arg0, %c0_i32 : i32, i32
  }
  func.func @transform_3(%arg0: i32, %arg1: i32) -> (i32, i32) {
    %c0_i32 = arith.constant 0 : i32
    %c0_i32_0 = arith.constant 0 : i32
    return %arg1, %c0_i32 : i32, i32
  }
  func.func @transform_4(%arg0: i32, %arg1: i32) -> (i32, i32) {
    %c0_i32 = arith.constant 0 : i32
    %c0_i32_0 = arith.constant 0 : i32
    return %arg0, %c0_i32 : i32, i32
  }
}

</mosaic_0001>

<bundles_post_ra>
// kernel: tpu_custom_call.1
= control target key start
LH: loop header
LB: loop body
LE: loop exit
PB: predicated region body
PF: predicated region fallthrough
CT: control target
= control target key end

     0   :  { %v1556_v1 = vmov 0   ;;  %v329_v30 = vlaneseq  ;;  %v2766_v43 = vmov 0  ;;  %v2726_v44 = vmov 0.0   ;;  %s2713_s3 = inlined_call_operand.vmem [shape: bf16[128,128], index: 3, kind: input, shape index: {}]   ;;  %s2714_s2 = inlined_call_operand.vmem [shape: bf16[128,128], index: 2, kind: input, shape index: {}]   ;;  %s2715_s0 = inlined_call_operand.vmem [shape: s32[128,1], index: 0, kind: input, shape index: {}]   ;;  %s2716_s1 = inlined_call_operand.vmem [shape: s32[1,128], index: 1, kind: input, shape index: {}]   ;;  %s2717_s4 = inlined_call_operand.vmem [shape: f32[128,1], index: 4, kind: output, shape index: {}]  }
   0x1   :  { %v1412_v0 = vld [vmem:[%s2713_s3] sm:$0xff]   ;;  %1410 = vset.pattern.permute.xlu0 %v1556_v1  ;;  %1411 = vset.pattern.permute.xlu1 %v1556_v1  ;;  %v1413_v2 = vld [vmem:[%s2713_s3 + $0x8] sm:$0xff]   ;;  %v1414_v3 = vld [vmem:[%s2713_s3 + $0x10] sm:$0xff]   ;;  %v2768_v46 = vmov 0  ;;  %v2778_v57 = vmov 0  ;;  %v1558_v59 = vmov -inf  }
   0x2   :  { %1359 = vmatprep.subr.bf16.mxu0 %v1412_v0  ;;  %1391 = vmatprep.subr.bf16.mxu1 %v1412_v0  ;;  %v1420_v4 = vld [vmem:[%s2714_s2] sm:$0xff]   ;;  %v1415_v6 = vld [vmem:[%s2713_s3 + $0x18] sm:$0xff]   ;;  %v403_v8 = vld [vmem:[%s2715_s0 + $0x10] sm:$0xff]  ;;  %v1671_v31 = vshrl.u32 %v329_v30, 7  ;;  %v1673_v32 = vand.u32 127, %v329_v30  ;;  %v2827_v49 = vmov 0 }
   0x3   :  { %1360 = vmatpush3.bf16.xpose.msra.mxu0 %v1412_v0  ;;  %1399 = vmatpush3.bf16.xpose.msra.mxu1 %v1412_v0  ;;  %v1421_v5 = vld [vmem:[%s2714_s2 + $0x20] sm:$0xff]   ;;  %v402_v9 = vld [vmem:[%s2715_s0 + $0x8] sm:$0xff]  ;;  %v404_v10 = vld [vmem:[%s2715_s0 + $0x18] sm:$0xff] }
   0x4   :  { %1361 = vmatprep.subr.bf16.mxu0 %v1413_v2  ;;  %1392 = vmatprep.subr.bf16.mxu1 %v1413_v2  ;;  %v401_v7 = vld [vmem:[%s2715_s0] sm:$0xff]  ;;  %v406_v12 = vld [vmem:[%s2715_s0 + $0x28] sm:$0xff]  ;;  %v407_v14 = vld [vmem:[%s2715_s0 + $0x30] sm:$0xff]  ;;  %v332_v33 = vadd.s32 16, %v1671_v31  ;;  %v331_v34 = vadd.s32 8, %v1671_v31  ;;  %vm368_vm0 = vcmp.ne.s32.totalorder %v1671_v31, %v1673_v32  ;;  %vm2720_vm1 = vcmp.lt.s32.totalorder %v1673_v32, 16 }
   0x5   :  { %1375 = vmatprep.mubr.bf16.mxu0 %v1420_v4  ;;  %1383 = vmatprep.mubr.bf16.mxu1 %v1421_v5  ;;  %v405_v11 = vld [vmem:[%s2715_s0 + $0x20] sm:$0xff]  ;;  %v408_v15 = vld [vmem:[%s2715_s0 + $0x38] sm:$0xff]  ;;  %v410_v17 = vld [vmem:[%s2715_s0 + $0x48] sm:$0xff]  ;;  %v333_v35 = vadd.s32 24, %v1671_v31  ;;  %v334_v37 = vadd.s32 32, %v1671_v31  ;;  %v340_v63 = vadd.s32 80, %v1671_v31 }
   0x6   :  { %419 = vperm.xlu0 %1410, %v401_v7   ;;  %425 = vperm.xlu1 %1411, %v403_v8   ;;  %v1416_v13 = vld [vmem:[%s2713_s3 + $0x20] sm:$0xff]   ;;  %v1417_v18 = vld [vmem:[%s2713_s3 + $0x28] sm:$0xff]   ;;  %v411_v19 = vld [vmem:[%s2715_s0 + $0x50] sm:$0xff]  ;;  %vm370_vm2 = vcmp.ne.s32.totalorder %v332_v33, %v1673_v32  ;;  %vm369_vm3 = vcmp.ne.s32.totalorder %v331_v34, %v1673_v32  ;;  %v338_v0 = vadd.s32 64, %v1671_v31 }
   0x7   :  { %v409_v16 = vld [vmem:[%s2715_s0 + $0x40] sm:$0xff]  ;;  %v412_v20 = vld [vmem:[%s2715_s0 + $0x58] sm:$0xff]  ;;  %v414_v21 = vld [vmem:[%s2715_s0 + $0x68] sm:$0xff]  ;;  %vm371_vm9 = vcmp.ne.s32.totalorder %v333_v35, %v1673_v32  ;;  %vm372_vm11 = vcmp.ne.s32.totalorder %v334_v37, %v1673_v32 }
   0x8   :  { %v1418_v22 = vld [vmem:[%s2713_s3 + $0x30] sm:$0xff]   ;;  %v1419_v23 = vld [vmem:[%s2713_s3 + $0x38] sm:$0xff]   ;;  %v1422_v24 = vld [vmem:[%s2714_s2 + $0x8] sm:$0xff]  }
   0x9   :  { %v1423_v25 = vld [vmem:[%s2714_s2 + $0x28] sm:$0xff]   ;;  %v1424_v26 = vld [vmem:[%s2714_s2 + $0x10] sm:$0xff]   ;;  %v1426_v28 = vld [vmem:[%s2714_s2 + $0x18] sm:$0xff]  }
   0xa   :  { %422 = vperm.xlu0 %1410, %v402_v9   ;;  %428 = vperm.xlu1 %1411, %v404_v10   ;;  %v1425_v27 = vld [vmem:[%s2714_s2 + $0x30] sm:$0xff]   ;;  %v1427_v29 = vld [vmem:[%s2714_s2 + $0x38] sm:$0xff]   ;;  %v1685_v36 = vld [vmem:[%s2716_s1] ss:$0 sm:$0xff] }
   0xb   :  { %1362 = vmatpush3.bf16.xpose.msra.mxu0 %v1413_v2  ;;  %1400 = vmatpush3.bf16.xpose.msra.mxu1 %v1413_v2  ;;  %vm1691_vm4 = vmand %vm368_vm0, %vm2720_vm1 }
   0xc   :  { %1363 = vmatprep.subr.bf16.mxu0 %v1414_v3  ;;  %1393 = vmatprep.subr.bf16.mxu1 %v1414_v3  ;;  %vm1697_vm5 = vmand %vm370_vm2, %vm2720_vm1 }
   0xd   :  { %vm1705_vm8 = vmand %vm369_vm3, %vm2720_vm1 }
   0xe   :  { %431 = vperm.xlu0 %1410, %v405_v11   ;;  %434 = vperm.xlu1 %1411, %v406_v12   ;;  %vm1728_vm13 = vmand %vm371_vm9, %vm2720_vm1  ;;  %vm2718_vm9 = vcmask 7168   ;;  %v2780_v11 = vmov 0  ;;  %v336_v12 = vadd.s32 48, %v1671_v31 }
   0xf   :  { %vm1739_vm0 = vmand %vm372_vm11, %vm2720_vm1  ;;  %71 = vst.msk [vmem:[#allocation5] sm:$0xff] %vm2718_vm9, %v2726_v44  ;;  %vm378_vm11 = vcmp.ne.s32.totalorder %v340_v63, %v1673_v32 }
  0x10   :  { %39 = vst.msk [vmem:[#allocation3] sm:$0xff] %vm2718_vm9, %v2726_v44  ;;  %40 = vst.msk [vmem:[#allocation3 + $0x8] sm:$0xff] %vm2718_vm9, %v2726_v44 }
  0x11   :  { %41 = vst.msk [vmem:[#allocation3 + $0x10] sm:$0xff] %vm2718_vm9, %v2726_v44  ;;  %42 = vst.msk [vmem:[#allocation3 + $0x18] sm:$0xff] %vm2718_vm9, %v2726_v44 }
  0x12   :  { %437 = vperm.xlu0 %1410, %v407_v14   ;;  %440 = vperm.xlu1 %1411, %v408_v15   ;;  %43 = vst.msk [vmem:[#allocation3 + $0x20] sm:$0xff] %vm2718_vm9, %v2726_v44  ;;  %44 = vst.msk [vmem:[#allocation3 + $0x28] sm:$0xff] %vm2718_vm9, %v2726_v44 }
  0x13   :  { %1364 = vmatpush3.bf16.xpose.msra.mxu0 %v1414_v3  ;;  %1401 = vmatpush3.bf16.xpose.msra.mxu1 %v1414_v3  ;;  %45 = vst.msk [vmem:[#allocation3 + $0x30] sm:$0xff] %vm2718_vm9, %v2726_v44  ;;  %46 = vst.msk [vmem:[#allocation3 + $0x38] sm:$0xff] %vm2718_vm9, %v2726_v44 }
  0x14   :  { %1365 = vmatprep.subr.bf16.mxu0 %v1415_v6  ;;  %1394 = vmatprep.subr.bf16.mxu1 %v1415_v6  ;;  %47 = vst.msk [vmem:[#allocation3 + $0x40] sm:$0xff] %vm2718_vm9, %v2726_v44  ;;  %48 = vst.msk [vmem:[#allocation3 + $0x48] sm:$0xff] %vm2718_vm9, %v2726_v44 }
  0x15   :  { %49 = vst.msk [vmem:[#allocation3 + $0x50] sm:$0xff] %vm2718_vm9, %v2726_v44  ;;  %50 = vst.msk [vmem:[#allocation3 + $0x58] sm:$0xff] %vm2718_vm9, %v2726_v44 }
  0x16   :  { %443 = vperm.xlu0 %1410, %v409_v16   ;;  %446 = vperm.xlu1 %1411, %v410_v17   ;;  %51 = vst.msk [vmem:[#allocation3 + $0x60] sm:$0xff] %vm2718_vm9, %v2726_v44  ;;  %52 = vst.msk [vmem:[#allocation3 + $0x68] sm:$0xff] %vm2718_vm9, %v2726_v44  ;;  %v967_v41 = vld [vmem:[#allocation5] sm:$0xff] }
  0x17   :  { %53 = vst.msk [vmem:[#allocation3 + $0x70] sm:$0xff] %vm2718_vm9, %v2726_v44  ;;  %54 = vst.msk [vmem:[#allocation3 + $0x78] sm:$0xff] %vm2718_vm9, %v2726_v44 }
  0x18   :  { %55 = vst.msk [vmem:[#allocation4] sm:$0xff] %vm2718_vm9, %v2726_v44  ;;  %56 = vst.msk [vmem:[#allocation4 + $0x8] sm:$0xff] %vm2718_vm9, %v2726_v44 }
  0x19   :  { %57 = vst.msk [vmem:[#allocation4 + $0x10] sm:$0xff] %vm2718_vm9, %v2726_v44  ;;  %58 = vst.msk [vmem:[#allocation4 + $0x18] sm:$0xff] %vm2718_vm9, %v2726_v44 }
  0x1a   :  { %449 = vperm.xlu0 %1410, %v411_v19   ;;  %452 = vperm.xlu1 %1411, %v412_v20   ;;  %59 = vst.msk [vmem:[#allocation4 + $0x20] sm:$0xff] %vm2718_vm9, %v2726_v44  ;;  %60 = vst.msk [vmem:[#allocation4 + $0x28] sm:$0xff] %vm2718_vm9, %v2726_v44  ;;  %v341_v20 = vadd.s32 88, %v1671_v31 }
  0x1b   :  { %1366 = vmatpush3.bf16.xpose.msra.mxu0 %v1415_v6  ;;  %1402 = vmatpush3.bf16.xpose.msra.mxu1 %v1415_v6  ;;  %61 = vst.msk [vmem:[#allocation4 + $0x30] sm:$0xff] %vm2718_vm9, %v2726_v44  ;;  %62 = vst.msk [vmem:[#allocation4 + $0x38] sm:$0xff] %vm2718_vm9, %v2726_v44 }
  0x1c   :  { %1367 = vmatprep.subr.bf16.mxu0 %v1416_v13  ;;  %1395 = vmatprep.subr.bf16.mxu1 %v1416_v13  ;;  %63 = vst.msk [vmem:[#allocation4 + $0x40] sm:$0xff] %vm2718_vm9, %v2726_v44  ;;  %64 = vst.msk [vmem:[#allocation4 + $0x48] sm:$0xff] %vm2718_vm9, %v2726_v44 }
  0x1d   :  { %65 = vst.msk [vmem:[#allocation4 + $0x50] sm:$0xff] %vm2718_vm9, %v2726_v44  ;;  %66 = vst.msk [vmem:[#allocation4 + $0x58] sm:$0xff] %vm2718_vm9, %v2726_v44 }
  0x1e   :  { %458 = vperm.xlu0 %1410, %v414_v21   ;;  %67 = vst.msk [vmem:[#allocation4 + $0x60] sm:$0xff] %vm2718_vm9, %v2726_v44  ;;  %68 = vst.msk [vmem:[#allocation4 + $0x68] sm:$0xff] %vm2718_vm9, %v2726_v44 }
  0x1f   :  { %69 = vst.msk [vmem:[#allocation4 + $0x70] sm:$0xff] %vm2718_vm9, %v2726_v44  ;;  %70 = vst.msk [vmem:[#allocation4 + $0x78] sm:$0xff] %vm2718_vm9, %v2726_v44 }
  0x20   :  { %72 = vst.msk [vmem:[#allocation5 + $0x8] sm:$0xff] %vm2718_vm9, %v2726_v44  ;;  %73 = vst.msk [vmem:[#allocation5 + $0x10] sm:$0xff] %vm2718_vm9, %v2726_v44 }
  0x21   :  { %74 = vst.msk [vmem:[#allocation5 + $0x18] sm:$0xff] %vm2718_vm9, %v2726_v44  ;;  %75 = vst.msk [vmem:[#allocation5 + $0x20] sm:$0xff] %vm2718_vm9, %v2726_v44 }
  0x22   :  { %76 = vst.msk [vmem:[#allocation5 + $0x28] sm:$0xff] %vm2718_vm9, %v2726_v44  ;;  %77 = vst.msk [vmem:[#allocation5 + $0x30] sm:$0xff] %vm2718_vm9, %v2726_v44 }
  0x23   :  { %1368 = vmatpush3.bf16.xpose.msra.mxu0 %v1416_v13  ;;  %1403 = vmatpush3.bf16.xpose.msra.mxu1 %v1416_v13  ;;  %78 = vst.msk [vmem:[#allocation5 + $0x38] sm:$0xff] %vm2718_vm9, %v2726_v44  ;;  %79 = vst.msk [vmem:[#allocation5 + $0x40] sm:$0xff] %vm2718_vm9, %v2726_v44 }
  0x24   :  { %1369 = vmatprep.subr.bf16.mxu0 %v1417_v18  ;;  %1396 = vmatprep.subr.bf16.mxu1 %v1417_v18  ;;  %80 = vst.msk [vmem:[#allocation5 + $0x48] sm:$0xff] %vm2718_vm9, %v2726_v44  ;;  %81 = vst.msk [vmem:[#allocation5 + $0x50] sm:$0xff] %vm2718_vm9, %v2726_v44 }
  0x25   :  { %82 = vst.msk [vmem:[#allocation5 + $0x58] sm:$0xff] %vm2718_vm9, %v2726_v44  ;;  %83 = vst.msk [vmem:[#allocation5 + $0x60] sm:$0xff] %vm2718_vm9, %v2726_v44 }
  0x26   :  { %84 = vst.msk [vmem:[#allocation5 + $0x68] sm:$0xff] %vm2718_vm9, %v2726_v44  ;;  %85 = vst.msk [vmem:[#allocation5 + $0x70] sm:$0xff] %vm2718_vm9, %v2726_v44 }
  0x27   :  { %86 = vst.msk [vmem:[#allocation5 + $0x78] sm:$0xff] %vm2718_vm9, %v2726_v44  ;;  %33 = vst.msk [vmem:[#allocation2 + $0x50] sm:$0xff] %vm2718_vm9, %v1558_v59 }
  0x28   :  { %23 = vst.msk [vmem:[#allocation2] sm:$0xff] %vm2718_vm9, %v1558_v59  ;;  %24 = vst.msk [vmem:[#allocation2 + $0x8] sm:$0xff] %vm2718_vm9, %v1558_v59  ;;  %v970_v38 = vld [vmem:[#allocation5 + $0x18] sm:$0xff] }
  0x29   :  { %25 = vst.msk [vmem:[#allocation2 + $0x10] sm:$0xff] %vm2718_vm9, %v1558_v59  ;;  %26 = vst.msk [vmem:[#allocation2 + $0x18] sm:$0xff] %vm2718_vm9, %v1558_v59 }
  0x2a   :  { %27 = vst.msk [vmem:[#allocation2 + $0x20] sm:$0xff] %vm2718_vm9, %v1558_v59  ;;  %28 = vst.msk [vmem:[#allocation2 + $0x28] sm:$0xff] %vm2718_vm9, %v1558_v59 }
  0x2b   :  { %1370 = vmatpush3.bf16.xpose.msra.mxu0 %v1417_v18  ;;  %1404 = vmatpush3.bf16.xpose.msra.mxu1 %v1417_v18  ;;  %29 = vst.msk [vmem:[#allocation2 + $0x30] sm:$0xff] %vm2718_vm9, %v1558_v59  ;;  %30 = vst.msk [vmem:[#allocation2 + $0x38] sm:$0xff] %vm2718_vm9, %v1558_v59 }
  0x2c   :  { %1371 = vmatprep.subr.bf16.mxu0 %v1418_v22  ;;  %1397 = vmatprep.subr.bf16.mxu1 %v1418_v22  ;;  %31 = vst.msk [vmem:[#allocation2 + $0x40] sm:$0xff] %vm2718_vm9, %v1558_v59  ;;  %32 = vst.msk [vmem:[#allocation2 + $0x48] sm:$0xff] %vm2718_vm9, %v1558_v59 }
  0x2d   :  { %34 = vst.msk [vmem:[#allocation2 + $0x58] sm:$0xff] %vm2718_vm9, %v1558_v59  ;;  %35 = vst.msk [vmem:[#allocation2 + $0x60] sm:$0xff] %vm2718_vm9, %v1558_v59 }
  0x2e   :  { %36 = vst.msk [vmem:[#allocation2 + $0x68] sm:$0xff] %vm2718_vm9, %v1558_v59  ;;  %37 = vst.msk [vmem:[#allocation2 + $0x70] sm:$0xff] %vm2718_vm9, %v1558_v59 }
  0x2f   :  { %38 = vst.msk [vmem:[#allocation2 + $0x78] sm:$0xff] %vm2718_vm9, %v1558_v59 }
  0x30   :  { %v2217_v51 = vld [vmem:[#allocation2 + $0x10] sm:$0xff] }
  0x31   :  { %2831 = vst [vmem:[#allocation14_spill] sm:$0xff] %v2217_v51 }
  0x33   :  { %1372 = vmatpush3.bf16.xpose.msra.mxu0 %v1418_v22  ;;  %1405 = vmatpush3.bf16.xpose.msra.mxu1 %v1418_v22  ;;  %v2782_v22 = vmov 0 }
  0x34   :  { %1373 = vmatprep.subr.bf16.mxu0 %v1419_v23  ;;  %1398 = vmatprep.subr.bf16.mxu1 %v1419_v23 }
  0x3b   :  { %1374 = vmatpush3.bf16.xpose.msra.mxu0 %v1419_v23  ;;  %1406 = vmatpush3.bf16.xpose.msra.mxu1 %v1419_v23 }
  0x42   :  { %1376 = vmatmul.mubr.bf16.vlgmr.msra.gmra.mrb[0].mxu0 %v1422_v24  ;;  %1384 = vmatmul.mubr.bf16.vlgmr.msra.gmra.mrb[0].mxu1 %v1423_v25 }
  0x43   :  { %1379 = vmatprep.mubr.bf16.mxu0 %v1424_v26  ;;  %1387 = vmatprep.mubr.bf16.mxu1 %v1425_v27  ;;  %v344_v26 = vadd.s32 112, %v1671_v31 }
  0x4a   :  { %1380 = vmatmul.mubr.bf16.gmra.mrb[4].mxu0 %v1426_v28  ;;  %1388 = vmatmul.mubr.bf16.gmra.mrb[4].mxu1 %v1427_v29 }
  0x85   :  { %v420_v39 = vpop.permute.xlu0 %419  ;;  %v426_v40 = vpop.permute.xlu1 %425 }
  0x86   :  { %vm470_vm6 = vcmp.eq.s32.totalorder %v420_v39, %v1685_v36  ;;  %vm472_vm7 = vcmp.eq.s32.totalorder %v426_v40, %v1685_v36  ;;  %v339_v39 = vadd.s32 72, %v1671_v31  ;;  %v335_v40 = vadd.s32 40, %v1671_v31 }
  0x87   :  { %vm1712_vm10 = vmand %vm470_vm6, %vm1691_vm4 }
  0x88   :  { %v2767_v43 = vsel %vm1712_vm10, 4294967295, %v2766_v43  ;;  %v1327_v45 = vsel %vm1712_vm10, 1.0, %v2726_v44  ;;  %vm1722_vm12 = vmand %vm472_vm7, %vm1697_vm5  ;;  %vm2806_vm10 = vcmp.lt.s32.totalorder %v1673_v32, 16 }
  0x89   :  { %v2769_v46 = vsel %vm1722_vm12, 4294967295, %v2768_v46  ;;  %v423_v47 = vpop.permute.xlu0 %422  ;;  %v429_v48 = vpop.permute.xlu1 %428  ;;  %1015 = vadd.xlane.f32.xlu1 %v1327_v45  ;;  %v1329_v50 = vsel %vm1722_vm12, 1.0, %v2726_v44 }
  0x8a   :  { %vm471_vm14 = vcmp.eq.s32.totalorder %v423_v47, %v1685_v36  ;;  %vm473_vm15 = vcmp.eq.s32.totalorder %v429_v48, %v1685_v36 }
  0x8b   :  { %vm1745_vm2 = vmand %vm471_vm14, %vm1705_vm8 }
  0x8c   :  { %v1328_v53 = vsel %vm1745_vm2, 1.0, %v2726_v44  ;;  %vm1754_vm3 = vmand %vm473_vm15, %vm1728_vm13  ;;  %vm376_vm15 = vcmp.ne.s32.totalorder %v338_v0, %v1673_v32  ;;  %v2791_v0 = vmov 0 }
  0x8d   :  { %v432_v55 = vpop.permute.xlu0 %431  ;;  %1019 = vadd.xlane.f32.xlu1 %v1329_v50  ;;  %1017 = vadd.xlane.f32.xlu0 %v1328_v53  ;;  %v1330_v56 = vsel %vm1754_vm3, 1.0, %v2726_v44  ;;  %v1883_v60 = vpop.permute.xlu1 %434  ;;  %vm1902_vm14 = vmand %vm378_vm11, %vm2720_vm1 }
  0x8e   :  { %vm474_vm6 = vcmp.eq.s32.totalorder %v432_v55, %v1685_v36  ;;  %v2781_v11 = vsel %vm1902_vm14, 4294967295, %v2780_v11 }
  0x8f   :  { %vm1764_vm7 = vmand %vm474_vm6, %vm1739_vm0  ;;  %vm379_vm6 = vcmp.ne.s32.totalorder %v341_v20, %v1673_v32 }
  0x90   :  { %v2779_v57 = vsel %vm1764_vm7, 4294967295, %v2778_v57  ;;  %v1331_v58 = vsel %vm1764_vm7, 1.0, %v2726_v44  ;;  %vm1995_vm9 = vmand %vm379_vm6, %vm2720_vm1  ;;  %vm373_vm6 = vcmp.ne.s32.totalorder %v335_v40, %v1673_v32  ;;  %v337_v40 = vadd.s32 56, %v1671_v31 }
  0x91   :  { %1023 = vadd.xlane.f32.xlu1 %v1331_v58  ;;  %1021 = vadd.xlane.f32.xlu0 %v1330_v56  ;;  %v1885_v61 = vpop.permute.xlu0 %437  ;;  %v1887_v62 = vpop.permute.xlu1 %440  ;;  %vm2045_vm7 = vmand %vm373_vm6, %vm2720_vm1  ;;  %vm2799_vm6 = vcmask 7168  }
  0x92   :  { %vm476_vm11 = vcmp.eq.s32.totalorder %v1885_v61, %v1685_v36 }
  0x95   :  { %v1891_v1 = vpop.permute.xlu0 %443  ;;  %v1893_v2 = vpop.permute.xlu1 %446 }
  0x99   :  { %v1930_v21 = vpop.permute.xlu0 %449  ;;  %v1938_v23 = vpop.permute.xlu1 %452 }
  0x9d   :  { %v1987_v55 = vpop.permute.xlu0 %458 }
 0x115   :  { %v1377_v3 = vpop.f32.mrb[0].mxu0  ;;  %v1385_v4 = vpop.f32.mrb[0].mxu1 }
 0x116   :  { %v1896_v5 = vmul.f32 2.0, %v1377_v3  ;;  %v1898_v6 = vmul.f32 2.0, %v1385_v4  ;;  %v249_v7 = vpop.f32.mrb[1].mxu0  ;;  %v281_v8 = vpop.f32.mrb[1].mxu1  ;;  %v969_v3 = vld [vmem:[#allocation5 + $0x10] sm:$0xff]  ;;  %v968_v4 = vld [vmem:[#allocation5 + $0x8] sm:$0xff] }
 0x117   :  { %v1378_v9 = vpop.f32.mrb[2].mxu0  ;;  %v1386_v10 = vpop.f32.mrb[2].mxu1  ;;  %v1908_v13 = vmul.f32 2.0, %v249_v7  ;;  %v1910_v14 = vmul.f32 2.0, %v281_v8 }
 0x118   :  { %v252_v15 = vpop.f32.mrb[3].mxu0  ;;  %v284_v16 = vpop.f32.mrb[3].mxu1  ;;  %v1915_v17 = vsel %vm1697_vm5, %v1896_v5, -inf  ;;  %v1920_v18 = vsel %vm1902_vm14, %v1898_v6, -inf  ;;  %vm1934_vm5 = vmand %vm376_vm15, %vm2720_vm1  ;;  %v1951_v29 = vmul.f32 2.0, %v1378_v9  ;;  %v1970_v45 = vmul.f32 2.0, %v1386_v10 }
 0x119   :  { %538 = vmax.xlane.f32.xlu0 %v1915_v17  ;;  %554 = vmax.xlane.f32.xlu1 %v1920_v18  ;;  %v1927_v19 = vsel %vm1691_vm4, %v1908_v13, -inf  ;;  %v2783_v22 = vsel %vm1934_vm5, 4294967295, %v2782_v22  ;;  %v1940_v24 = vmul.f32 2.0, %v252_v15  ;;  %v1945_v25 = vsel %vm1934_vm5, %v1910_v14, -inf  ;;  %v1016_v56 = vpop.xlane.xlu1 %1015  ;;  %vm2809_vm14 = vmmov %vm2806_vm10 }
 0x11a   :  { %vm374_vm4 = vcmp.ne.s32.totalorder %v336_v12, %v1673_v32  ;;  %2786 = vst [vmem:[#allocation6_spill] sm:$0xff] %v1970_v45  ;;  %v1979_v50 = vsel %vm1728_vm13, %v1951_v29, -inf  ;;  %v1047_v59 = vadd.f32 %v1016_v56, %v967_v41  ;;  %v2025_v8 = vmul.f32 2.0, %v284_v16  ;;  %v1018_v10 = vpop.xlane.xlu0 %1017 }
 0x11b   :  { %vm1964_vm15 = vmand %vm374_vm4, %vm2720_vm1  ;;  %v1984_v53 = vsel %vm1705_vm8, %v1940_v24, -inf  ;;  %vm382_vm4 = vcmp.ne.s32.totalorder %v344_v26, %v1673_v32  ;;  %v2030_v61 = vsel %vm1995_vm9, %v1970_v45, -inf  ;;  %v342_v16 = vadd.s32 96, %v1671_v31 }
 0x11c   :  { %vm2011_vm8 = vmand %vm476_vm11, %vm1964_vm15  ;;  %2793 = vst [vmem:[#allocation7_spill] sm:$0xff] %v2025_v8  ;;  %vm377_vm11 = vcmp.ne.s32.totalorder %v339_v39, %v1673_v32  ;;  %v1048_v26 = vadd.f32 %v1018_v10, %v968_v4  ;;  %v345_v56 = vadd.s32 120, %v1671_v31 }
 0x11d   :  { %v1381_v27 = vpop.f32.mrb[4].mxu0  ;;  %v1389_v28 = vpop.f32.mrb[4].mxu1  ;;  %534 = vmax.xlane.f32.xlu0 %v1927_v19  ;;  %550 = vmax.xlane.f32.xlu1 %v1945_v25  ;;  %vm2017_vm13 = vmand %vm382_vm4, %vm2720_vm1 }
 0x11e   :  { %v265_v30 = vpop.f32.mrb[5].mxu0  ;;  %v297_v33 = vpop.f32.mrb[5].mxu1  ;;  %v1956_v34 = vmul.f32 2.0, %v1381_v27  ;;  %v1999_v42 = vmul.f32 2.0, %v1389_v28  ;;  %v2792_v0 = vsel %vm2017_vm13, 4294967295, %v2791_v0  ;;  %v971_v28 = vld [vmem:[#allocation5 + $0x20] sm:$0xff]  ;;  %vm2800_vm4 = vmmov %vm2799_vm6 }
 0x11f   :  { %v1958_v35 = vpop.f32.mrb[6].mxu0  ;;  %v1960_v37 = vpop.f32.mrb[6].mxu1  ;;  %1064 = vst.msk [vmem:[#allocation5 + $0x8] sm:$0xff] %vm2800_vm4, %v1048_v26  ;;  %v2076_v4 = vmul.f32 2.0, %v265_v30  ;;  %vm380_vm4 = vcmp.ne.s32.totalorder %v342_v16, %v1673_v32  ;;  %v2824_v27 = vmov 0 }
 0x120   :  { %v1972_v47 = vpop.f32.mrb[7].mxu0  ;;  %v1974_v48 = vpop.f32.mrb[7].mxu1  ;;  %v2004_v58 = vsel %vm1964_vm15, %v1956_v34, -inf  ;;  %vm2794_vm15 = vcmask 7168   ;;  %v2041_v12 = vsel %vm2017_vm13, %v1999_v42, -inf  ;;  %vm2095_vm13 = vmand %vm380_vm4, %vm2806_vm10  ;;  %v2110_v16 = vmul.f32 2.0, %v1960_v37 }
 0x121   :  { %540 = vmax.xlane.f32.xlu0 %v1979_v50  ;;  %536 = vmax.xlane.f32.xlu1 %v1984_v53  ;;  %1063 = vst.msk [vmem:[#allocation5] sm:$0xff] %vm2794_vm15, %v1047_v59  ;;  %v1020_v9 = vpop.xlane.xlu1 %1019  ;;  %vm2052_vm15 = vmand %vm377_vm11, %vm2720_vm1  ;;  %vm2801_vm11 = vcmp.eq.s32.totalorder %v1883_v60, %v1685_v36  ;;  %v2087_v26 = vsel %vm1739_vm0, %v2076_v4, -inf  ;;  %vm383_vm0 = vcmp.ne.s32.totalorder %v345_v56, %v1673_v32  ;;  %v2131_v37 = vmul.f32 2.0, %v1972_v47 }
 0x122   :  { %v1049_v20 = vadd.f32 %v1020_v9, %v969_v3  ;;  %v2059_v39 = vsel %vm2052_vm15, %v2025_v8, -inf  ;;  %vm2071_vm1 = vmand %vm2801_vm11, %vm2045_vm7  ;;  %v1022_v3 = vpop.xlane.xlu0 %1021  ;;  %vm2804_vm11 = vcmask 7168   ;;  %2812 = vst [vmem:[#allocation8_spill] sm:$0xff] %v2110_v16  ;;  %v343_v56 = vadd.s32 104, %v1671_v31 }
 0x123   :  { %v1050_v10 = vadd.f32 %v1022_v3, %v970_v38  ;;  %v1332_v60 = vsel %vm2071_vm1, 1.0, %v2726_v44  ;;  %vm2805_vm12 = vmmov %vm2804_vm11  ;;  %vm477_vm4 = vcmp.eq.s32.totalorder %v1887_v62, %v1685_v36  ;;  %v2150_v47 = vmul.f32 2.0, %v1974_v48 }
 0x124   :  { %1065 = vst.msk [vmem:[#allocation5 + $0x10] sm:$0xff] %vm2799_vm6, %v1049_v20  ;;  %v2079_v20 = vmul.f32 2.0, %v297_v33  ;;  %vm375_vm6 = vcmp.ne.s32.totalorder %v337_v40, %v1673_v32  ;;  %v2100_v33 = vmul.f32 2.0, %v1958_v35  ;;  %v2821_v3 = vmov 0 }
 0x125   :  { %556 = vmax.xlane.f32.xlu0 %v2030_v61  ;;  %546 = vmax.xlane.f32.xlu1 %v2004_v58  ;;  %v1024_v59 = vpop.xlane.xlu1 %1023  ;;  %1066 = vst.msk [vmem:[#allocation5 + $0x18] sm:$0xff] %vm2805_vm12, %v1050_v10  ;;  %vm2105_vm5 = vmand %vm375_vm6, %vm2809_vm14  ;;  %vm381_vm14 = vcmp.ne.s32.totalorder %v343_v56, %v1673_v32  ;;  %v413_v32 = vld [vmem:[%s2715_s0 + $0x60] sm:$0xff]  ;;  %v888_v38 = vsel %vm1745_vm2, %v1940_v24, 0.0  ;;  %v892_v52 = vsel %vm2071_vm1, %v2131_v37, 0.0  ;;  %vm480_vm1 = vcmp.eq.s32.totalorder %v1930_v21, %v1685_v36 }
 0x126   :  { %v1051_v9 = vadd.f32 %v1024_v59, %v971_v28  ;;  %v2115_v28 = vsel %vm2105_vm5, %v2100_v33, -inf  ;;  %v2120_v35 = vsel %vm2095_vm13, %v2079_v20, -inf  ;;  %vm2126_vm12 = vmand %vm383_vm0, %vm2806_vm10  ;;  %v2143_v59 = vsel %vm2045_vm7, %v2131_v37, -inf  ;;  %2815 = vst [vmem:[#allocation9_spill] sm:$0xff] %v2150_v47 }
 0x127   :  { %v2136_v40 = vsel %vm2126_vm12, %v2110_v16, -inf  ;;  %vm2816_vm6 = vmmov %vm2806_vm10  ;;  %vm479_vm0 = vcmp.eq.s32.totalorder %v1893_v2, %v1685_v36  ;;  %v415_v2 = vld [vmem:[%s2715_s0 + $0x70] sm:$0xff]  ;;  %v2282_v16 = vld [vmem:[#allocation2 + $0x48] sm:$0xff] }
 0x128   :  { %1067 = vst.msk [vmem:[#allocation5 + $0x20] sm:$0xff] %vm2804_vm11, %v1051_v9  ;;  %vm2154_vm11 = vmand %vm381_vm14, %vm2816_vm6 }
 0x129   :  { %552 = vmax.xlane.f32.xlu0 %v2059_v39  ;;  %562 = vmax.xlane.f32.xlu1 %v2041_v12  ;;  %v2161_v15 = vsel %vm2154_vm11, %v2150_v47, -inf  ;;  %vm2166_vm7 = vmand %vm477_vm4, %vm2105_vm5  ;;  %vm481_vm5 = vcmp.eq.s32.totalorder %v1938_v23, %v1685_v36  ;;  %v416_v23 = vld [vmem:[%s2715_s0 + $0x78] sm:$0xff]  ;;  %2850 = vst [vmem:[#allocation27_spill] sm:$0xff] %v2282_v16 }
 0x12a   :  { %v1334_v48 = vsel %vm2166_vm7, 1.0, %v2726_v44  ;;  %vm2180_vm10 = vmand %vm479_vm0, %vm2052_vm15  ;;  %vm483_vm15 = vcmp.eq.s32.totalorder %v1987_v55, %v1685_v36 }
 0x12b   :  { %v2822_v3 = vsel %vm2180_vm10, 4294967295, %v2821_v3  ;;  %v1336_v9 = vsel %vm2180_vm10, 1.0, %v2726_v44  ;;  %vm2194_vm14 = vmand %vm481_vm5, %vm1995_vm9  ;;  %vm2836_vm9 = vcmask 7168  }
 0x12c   :  { %2823 = vst [vmem:[#allocation10_spill] sm:$0xff] %v2822_v3  ;;  %v2825_v27 = vsel %vm2194_vm14, 4294967295, %v2824_v27  ;;  %v1338_v10 = vsel %vm2194_vm14, 1.0, %v2726_v44  ;;  %vm2208_vm4 = vmand %vm483_vm15, %vm2154_vm11  ;;  %v976_v3 = vld [vmem:[#allocation5 + $0x48] sm:$0xff] }
 0x12d   :  { %1025 = vadd.xlane.f32.xlu0 %v1332_v60  ;;  %542 = vmax.xlane.f32.xlu1 %v2087_v26  ;;  %2826 = vst [vmem:[#allocation11_spill] sm:$0xff] %v2825_v27  ;;  %v2828_v49 = vsel %vm2208_vm4, 4294967295, %v2827_v49  ;;  %v1340_v55 = vsel %vm2208_vm4, 1.0, %v2726_v44  ;;  %v2215_v60 = vld [vmem:[#allocation2 + $0x50] sm:$0xff]  ;;  %vm2837_vm6 = vmmov %vm2836_vm9  ;;  %v2246_v44 = vld [vmem:[#allocation2 + $0x18] sm:$0xff] }
 0x12e   :  { %2829 = vst [vmem:[#allocation12_spill] sm:$0xff] %v2828_v49  ;;  %2830 = vst [vmem:[#allocation13_spill] sm:$0xff] %v2215_v60  ;;  %v972_v49 = vld [vmem:[#allocation5 + $0x28] sm:$0xff]  ;;  %v2311_v27 = vld [vmem:[#allocation2 + $0x60] sm:$0xff] }
 0x12f   :  { %2841 = vst [vmem:[#allocation22_spill] sm:$0xff] %v2246_v44  ;;  %vm2842_vm11 = vmmov %vm2837_vm6 }
 0x130   :  { %vm2843_vm0 = vmmov %vm2837_vm6  ;;  %2857 = vst [vmem:[#allocation31_spill] sm:$0xff] %v2311_v27 }
 0x131   :  { %548 = vmax.xlane.f32.xlu0 %v2115_v28  ;;  %558 = vmax.xlane.f32.xlu1 %v2120_v35  ;;  %vm2846_vm5 = vmmov %vm2843_vm0 }
 0x132   :  { %vm2847_vm15 = vmmov %vm2843_vm0 }
 0x133   :  { %vm2876_vm2 = vmmov %vm2843_vm0 }
 0x135   :  { %564 = vmax.xlane.f32.xlu0 %v2136_v40 }
 0x139   :  { %544 = vmax.xlane.f32.xlu0 %v2143_v59 }
 0x13d   :  { %560 = vmax.xlane.f32.xlu0 %v2161_v15 }
 0x141   :  { %1029 = vadd.xlane.f32.xlu0 %v1334_v48 }
 0x142   :  { %455 = vperm.xlu1 %1411, %v413_v32  }
 0x145   :  { %1033 = vadd.xlane.f32.xlu0 %v1336_v9  ;;  %v2227_v9 = vld [vmem:[#allocation2] sm:$0xff] }
 0x146   :  { %461 = vperm.xlu1 %1411, %v415_v2   ;;  %v2225_v2 = vld [vmem:[#allocation2 + $0x40] sm:$0xff]  ;;  %2835 = vst [vmem:[#allocation18_spill] sm:$0xff] %v2227_v9 }
 0x147   :  { %2834 = vst [vmem:[#allocation17_spill] sm:$0xff] %v2225_v2 }
 0x149   :  { %1037 = vadd.xlane.f32.xlu0 %v1338_v10  ;;  %v2263_v10 = vld [vmem:[#allocation2 + $0x30] sm:$0xff] }
 0x14a   :  { %464 = vperm.xlu1 %1411, %v416_v23   ;;  %v2244_v23 = vld [vmem:[#allocation2 + $0x8] sm:$0xff]  ;;  %2844 = vst [vmem:[#allocation23_spill] sm:$0xff] %v2263_v10 }
 0x14b   :  { %2840 = vst [vmem:[#allocation21_spill] sm:$0xff] %v2244_v23 }
 0x14d   :  { %1041 = vadd.xlane.f32.xlu0 %v1340_v55 }
 0x1a6   :  { %v555_v56 = vpop.xlane.xlu1 %554  ;;  %v539_v32 = vpop.xlane.xlu0 %538 }
 0x1a7   :  { %v2220_v48 = vmax.f32 %v2215_v60, %v555_v56  ;;  %v2223_v31 = vmax.f32 %v2217_v51, %v539_v32  ;;  %v2313_v60 = vld [vmem:[#allocation2 + $0x38] sm:$0xff] }
 0x1a8   :  { %2858 = vst [vmem:[#allocation32_spill] sm:$0xff] %v2313_v60 }
 0x1a9   :  { %2832 = vst [vmem:[#allocation15_spill] sm:$0xff] %v2220_v48  ;;  %2833 = vst [vmem:[#allocation16_spill] sm:$0xff] %v2223_v31  ;;  %642 = vperm.xlu1 %1411, %v2223_v31  }
 0x1aa   :  { %865 = vst.msk [vmem:[#allocation2 + $0x50] sm:$0xff] %vm2836_vm9, %v2220_v48  ;;  %v551_v55 = vpop.xlane.xlu1 %550  ;;  %v535_v56 = vpop.xlane.xlu0 %534  ;;  %vm2851_vm9 = vmmov %vm2843_vm0 }
 0x1ab   :  { %857 = vst.msk [vmem:[#allocation2 + $0x10] sm:$0xff] %vm2837_vm6, %v2223_v31  ;;  %v2239_v32 = vmax.f32 %v2225_v2, %v551_v55  ;;  %v2242_v7 = vmax.f32 %v2227_v9, %v535_v56  ;;  %v2265_v2 = vld [vmem:[#allocation2 + $0x58] sm:$0xff]  ;;  %vm2852_vm6 = vmmov %vm2843_vm0 }
 0x1ac   :  { %2845 = vst [vmem:[#allocation24_spill] sm:$0xff] %v2265_v2 }
 0x1ad   :  { %2838 = vst [vmem:[#allocation19_spill] sm:$0xff] %v2239_v32  ;;  %2839 = vst [vmem:[#allocation20_spill] sm:$0xff] %v2242_v7  ;;  %682 = vperm.xlu1 %1411, %v2220_v48   ;;  %v2280_v48 = vld [vmem:[#allocation2 + $0x70] sm:$0xff] }
 0x1ae   :  { %863 = vst.msk [vmem:[#allocation2 + $0x40] sm:$0xff] %vm2842_vm11, %v2239_v32  ;;  %v537_v55 = vpop.xlane.xlu1 %536  ;;  %v541_v56 = vpop.xlane.xlu0 %540  ;;  %2849 = vst [vmem:[#allocation26_spill] sm:$0xff] %v2280_v48 }
 0x1af   :  { %855 = vst.msk [vmem:[#allocation2] sm:$0xff] %vm2843_vm0, %v2242_v7  ;;  %v2258_v31 = vmax.f32 %v2244_v23, %v537_v55  ;;  %v2261_v51 = vmax.f32 %v2246_v44, %v541_v56  ;;  %vm2855_vm11 = vmmov %vm2843_vm0 }
 0x1b1   :  { %856 = vst.msk [vmem:[#allocation2 + $0x8] sm:$0xff] %vm2846_vm5, %v2258_v31  ;;  %632 = vperm.xlu1 %1411, %v2242_v7   ;;  %v2297_v7 = vld [vmem:[#allocation2 + $0x20] sm:$0xff]  ;;  %vm2859_vm5 = vmmov %vm2843_vm0 }
 0x1b2   :  { %858 = vst.msk [vmem:[#allocation2 + $0x18] sm:$0xff] %vm2847_vm15, %v2261_v51  ;;  %v547_v55 = vpop.xlane.xlu1 %546  ;;  %v557_v9 = vpop.xlane.xlu0 %556  ;;  %2854 = vst [vmem:[#allocation29_spill] sm:$0xff] %v2297_v7 }
 0x1b3   :  { %v2275_v56 = vmax.f32 %v2263_v10, %v547_v55  ;;  %v2278_v44 = vmax.f32 %v2265_v2, %v557_v9  ;;  %vm2860_vm15 = vmmov %vm2843_vm0 }
 0x1b5   :  { %2848 = vst [vmem:[#allocation25_spill] sm:$0xff] %v2275_v56  ;;  %861 = vst.msk [vmem:[#allocation2 + $0x30] sm:$0xff] %vm2851_vm9, %v2275_v56  ;;  %672 = vperm.xlu1 %1411, %v2239_v32  }
 0x1b6   :  { %866 = vst.msk [vmem:[#allocation2 + $0x58] sm:$0xff] %vm2852_vm6, %v2278_v44  ;;  %v563_v55 = vpop.xlane.xlu1 %562  ;;  %v553_v23 = vpop.xlane.xlu0 %552  ;;  %vm2863_vm9 = vmmov %vm2843_vm0 }
 0x1b7   :  { %v2292_v9 = vmax.f32 %v2280_v48, %v563_v55  ;;  %v2295_v2 = vmax.f32 %v2282_v16, %v553_v23  ;;  %vm2864_vm6 = vmmov %vm2843_vm0 }
 0x1b9   :  { %2853 = vst [vmem:[#allocation28_spill] sm:$0xff] %v2292_v9  ;;  %869 = vst.msk [vmem:[#allocation2 + $0x70] sm:$0xff] %vm2855_vm11, %v2292_v9  ;;  %662 = vperm.xlu1 %1411, %v2275_v56  }
 0x1ba   :  { %864 = vst.msk [vmem:[#allocation2 + $0x48] sm:$0xff] %vm2843_vm0, %v2295_v2  ;;  %v543_v55 = vpop.xlane.xlu1 %542  ;;  %v1026_v23 = vpop.xlane.xlu0 %1025  ;;  %vm2866_vm11 = vmmov %vm2843_vm0 }
 0x1bb   :  { %v2309_v32 = vmax.f32 %v2297_v7, %v543_v55  ;;  %v1052_v47 = vadd.f32 %v1026_v23, %v972_v49  ;;  %v2327_v23 = vld [vmem:[#allocation2 + $0x78] sm:$0xff] }
 0x1bc   :  { %2862 = vst [vmem:[#allocation34_spill] sm:$0xff] %v2327_v23 }
 0x1bd   :  { %2856 = vst [vmem:[#allocation30_spill] sm:$0xff] %v2309_v32  ;;  %859 = vst.msk [vmem:[#allocation2 + $0x20] sm:$0xff] %vm2859_vm5, %v2309_v32  ;;  %702 = vperm.xlu1 %1411, %v2292_v9   ;;  %v2341_v9 = vld [vmem:[#allocation2 + $0x28] sm:$0xff] }
 0x1be   :  { %1068 = vst.msk [vmem:[#allocation5 + $0x28] sm:$0xff] %vm2860_vm15, %v1052_v47  ;;  %v559_v10 = vpop.xlane.xlu1 %558  ;;  %v549_v16 = vpop.xlane.xlu0 %548  ;;  %2865 = vst [vmem:[#allocation35_spill] sm:$0xff] %v2341_v9 }
 0x1bf   :  { %v2322_v55 = vmax.f32 %v2311_v27, %v559_v10  ;;  %v2325_v49 = vmax.f32 %v2313_v60, %v549_v16 }
 0x1c1   :  { %2861 = vst [vmem:[#allocation33_spill] sm:$0xff] %v2322_v55  ;;  %867 = vst.msk [vmem:[#allocation2 + $0x60] sm:$0xff] %vm2863_vm9, %v2322_v55  ;;  %652 = vperm.xlu1 %1411, %v2309_v32   ;;  %v2351_v32 = vld [vmem:[#allocation2 + $0x68] sm:$0xff] }
 0x1c2   :  { %862 = vst.msk [vmem:[#allocation2 + $0x38] sm:$0xff] %vm2864_vm6, %v2325_v49  ;;  %v456_v10 = vpop.permute.xlu1 %455  ;;  %v565_v7 = vpop.xlane.xlu0 %564  ;;  %2867 = vst [vmem:[#allocation36_spill] sm:$0xff] %v2351_v32 }
 0x1c3   :  { %v2339_v16 = vmax.f32 %v2327_v23, %v565_v7  ;;  %vm2871_vm9 = vmmov %vm2843_vm0 }
 0x1c4   :  { %vm2873_vm6 = vmmov %vm2843_vm0 }
 0x1c5   :  { %870 = vst.msk [vmem:[#allocation2 + $0x78] sm:$0xff] %vm2866_vm11, %v2339_v16  ;;  %692 = vperm.xlu1 %1411, %v2322_v55   ;;  %v974_v55 = vld [vmem:[#allocation5 + $0x38] sm:$0xff]  ;;  %vm2875_vm11 = vmmov %vm2843_vm0 }
 0x1c6   :  { %v462_v47 = vpop.permute.xlu1 %461  ;;  %v545_v60 = vpop.xlane.xlu0 %544 }
 0x1c7   :  { %v2349_v27 = vmax.f32 %v2341_v9, %v545_v60  ;;  %v2868_v60 = vmov 0  ;;  %v2872_v9 = vmov 0.0  }
 0x1c8   :  { %v1333_v54 = vsel %vm2011_vm8, 1.0, %v2872_v9 }
 0x1c9   :  { %860 = vst.msk [vmem:[#allocation2 + $0x28] sm:$0xff] %vm2843_vm0, %v2349_v27 }
 0x1ca   :  { %v465_v56 = vpop.permute.xlu1 %464  ;;  %v561_v48 = vpop.xlane.xlu0 %560 }
 0x1cb   :  { %vm485_vm5 = vcmp.eq.s32.totalorder %v465_v56, %v1685_v36  ;;  %v2359_v23 = vmax.f32 %v2351_v32, %v561_v48  ;;  %v978_v32 = vld [vmem:[#allocation5 + $0x58] sm:$0xff] }
 0x1cc   :  { %vm2363_vm15 = vmand %vm485_vm5, %vm2126_vm12 }
 0x1cd   :  { %v2869_v60 = vsel %vm2363_vm15, 4294967295, %v2868_v60  ;;  %868 = vst.msk [vmem:[#allocation2 + $0x68] sm:$0xff] %vm2871_vm9, %v2359_v23  ;;  %v1342_v56 = vsel %vm2363_vm15, 1.0, %v2872_v9  ;;  %vm2874_vm12 = vmmov %vm2843_vm0  ;;  %vm478_vm0 = vcmp.eq.s32.totalorder %v1891_v1, %v1685_v36  ;;  %vm2880_vm9 = vnez %v2781_v11 }
 0x1ce   :  { %2870 = vst [vmem:[#allocation37_spill] sm:$0xff] %v2869_v60  ;;  %1045 = vadd.xlane.f32.xlu0 %v1342_v56  ;;  %v1030_v48 = vpop.xlane.xlu0 %1029  ;;  %v890_v60 = vsel %vm1754_vm3, %v1951_v29, 0.0  ;;  %vm2877_vm3 = vnez %v2783_v22 }
 0x1cf   :  { %v1054_v45 = vadd.f32 %v1030_v48, %v974_v55  ;;  %v980_v48 = vld [vmem:[#allocation5 + $0x68] sm:$0xff]  ;;  %vm2394_vm5 = vmand %vm478_vm0, %vm2877_vm3  ;;  %vm2885_vm0 = vnez %v2792_v0 }
 0x1d1   :  { %1070 = vst.msk [vmem:[#allocation5 + $0x38] sm:$0xff] %vm2873_vm6, %v1054_v45  ;;  %vm2405_vm6 = vmand %vm480_vm1, %vm2880_vm9  ;;  %vm2889_vm1 = vnez %v2769_v46  ;;  %vm2890_vm9 = vnez %v2779_v57 }
 0x1d2   :  { %905 = vadd.xlane.f32.xlu0 %v888_v38  ;;  %v1034_v8 = vpop.xlane.xlu0 %1033  ;;  %v1337_v22 = vsel %vm2405_vm6, 1.0, %v2872_v9  ;;  %v889_v0 = vsel %vm2889_vm1, %v1896_v5, 0.0  ;;  %v891_v37 = vsel %vm2890_vm9, %v2076_v4, 0.0  ;;  %v894_v5 = vsel %vm2166_vm7, %v2100_v33, 0.0 }
 0x1d3   :  { %v1056_v7 = vadd.f32 %v1034_v8, %v976_v3  ;;  %v1335_v8 = vsel %vm2394_vm5, 1.0, %v2872_v9 }
 0x1d5   :  { %1072 = vst.msk [vmem:[#allocation5 + $0x48] sm:$0xff] %vm2874_vm12, %v1056_v7  ;;  %vm482_vm12 = vcmp.eq.s32.totalorder %v456_v10, %v1685_v36 }
 0x1d6   :  { %909 = vadd.xlane.f32.xlu0 %v890_v60  ;;  %v1038_v56 = vpop.xlane.xlu0 %1037 }
 0x1d7   :  { %v1058_v55 = vadd.f32 %v1038_v56, %v978_v32 }
 0x1d9   :  { %1074 = vst.msk [vmem:[#allocation5 + $0x58] sm:$0xff] %vm2875_vm11, %v1058_v55  ;;  %vm2416_vm11 = vmand %vm482_vm12, %vm2095_vm13  ;;  %vm2888_vm13 = vnez %v2767_v43  ;;  %v2891_v43 = vsel %vm2011_vm8, %v1956_v34, 0.0  ;;  %v872_v55 = vld [vmem:[#allocation4 + $0x8] sm:$0xff]  ;;  %vm2892_vm8 = vcmask 7168  }
 0x1da   :  { %913 = vadd.xlane.f32.xlu0 %v892_v52  ;;  %v1042_v24 = vpop.xlane.xlu0 %1041  ;;  %v1339_v11 = vsel %vm2416_vm11, 1.0, %v2872_v9  ;;  %vm2893_vm7 = vmmov %vm2892_vm8 }
 0x1db   :  { %v1060_v45 = vadd.f32 %v1042_v24, %v980_v48  ;;  %vm2894_vm12 = vmmov %vm2893_vm7 }
 0x1dd   :  { %1076 = vst.msk [vmem:[#allocation5 + $0x68] sm:$0xff] %vm2876_vm2, %v1060_v45  ;;  %vm484_vm2 = vcmp.eq.s32.totalorder %v462_v47, %v1685_v36  ;;  %v887_v36 = vsel %vm2888_vm13, %v1908_v13, 0.0 }
 0x1de   :  { %vm2427_vm3 = vmand %vm484_vm2, %vm2885_vm0 }
 0x1df   :  { %v1341_v30 = vsel %vm2427_vm3, 1.0, %v2872_v9  ;;  %vm2895_vm2 = vmmov %vm2893_vm7 }
 0x1e0   :  { %vm2896_vm0 = vmmov %vm2895_vm2 }
 0x1e1   :  { %vm2897_vm13 = vmmov %vm2896_vm0 }
 0x1e2   :  { %vm2898_vm1 = vmmov %vm2896_vm0 }
 0x1e3   :  { %vm2899_vm9 = vmmov %vm2896_vm0 }
 0x1e9   :  { %1027 = vadd.xlane.f32.xlu1 %v1333_v54  ;;  %v876_v54 = vld [vmem:[#allocation4 + $0x28] sm:$0xff] }
 0x1ed   :  { %1031 = vadd.xlane.f32.xlu1 %v1335_v8 }
 0x1f0   :  { %637 = vperm.xlu0 %1410, %v2258_v31  }
 0x1f1   :  { %1035 = vadd.xlane.f32.xlu1 %v1337_v22 }
 0x1f4   :  { %647 = vperm.xlu0 %1410, %v2261_v51  }
 0x1f5   :  { %1039 = vadd.xlane.f32.xlu1 %v1339_v11 }
 0x1f8   :  { %677 = vperm.xlu0 %1410, %v2295_v2  }
 0x1f9   :  { %1043 = vadd.xlane.f32.xlu1 %v1341_v30 }
 0x1fc   :  { %687 = vperm.xlu0 %1410, %v2278_v44  }
 0x1fd   :  { %903 = vadd.xlane.f32.xlu1 %v887_v36 }
 0x200   :  { %667 = vperm.xlu0 %1410, %v2325_v49  }
 0x201   :  { %907 = vadd.xlane.f32.xlu1 %v889_v0 }
 0x204   :  { %707 = vperm.xlu0 %1410, %v2339_v16  }
 0x205   :  { %911 = vadd.xlane.f32.xlu1 %v891_v37 }
 0x208   :  { %657 = vperm.xlu0 %1410, %v2349_v27  }
 0x209   :  { %915 = vadd.xlane.f32.xlu1 %v2891_v43 }
 0x20c   :  { %697 = vperm.xlu0 %1410, %v2359_v23  }
 0x228   :  { %v643_v13 = vpop.permute.xlu1 %642 }
 0x229   :  { %v712_v46 = vsub.f32 %v1915_v17, %v643_v13 }
 0x22b   :  { %v730_v3 = vmul.f32 1.442695, %v712_v46  ;;  %917 = vadd.xlane.f32.xlu0 %v894_v5 }
 0x22c   :  { %v683_v57 = vpop.permute.xlu1 %682 }
 0x22d   :  { %1428 = vpow2.f32 %v730_v3  ;;  %v720_v4 = vsub.f32 %v1920_v18, %v683_v57  ;;  %v982_v18 = vld [vmem:[#allocation5 + $0x78] sm:$0xff] }
 0x22f   :  { %v746_v32 = vmul.f32 1.442695, %v720_v4  ;;  %v973_v4 = vld [vmem:[#allocation5 + $0x30] sm:$0xff] }
 0x230   :  { %v633_v63 = vpop.permute.xlu1 %632 }
 0x231   :  { %1430 = vpow2.f32 %v746_v32  ;;  %v710_v34 = vsub.f32 %v1927_v19, %v633_v63 }
 0x233   :  { %v726_v9 = vmul.f32 1.442695, %v710_v34 }
 0x234   :  { %v673_v47 = vpop.permute.xlu1 %672 }
 0x235   :  { %1432 = vpow2.f32 %v726_v9  ;;  %v718_v17 = vsub.f32 %v1945_v25, %v673_v47  ;;  %v874_v25 = vld [vmem:[#allocation4 + $0x18] sm:$0xff] }
 0x237   :  { %v1429_v10 = vpop.eup %1428  ;;  %v742_v7 = vmul.f32 1.442695, %v718_v17 }
 0x238   :  { %794 = vadd.xlane.f32.xlu0 %v1429_v10  ;;  %v663_v48 = vpop.permute.xlu1 %662 }
 0x239   :  { %1434 = vpow2.f32 %v742_v7  ;;  %v716_v36 = vsub.f32 %v2004_v58, %v663_v48 }
 0x23b   :  { %v1431_v33 = vpop.eup %1430  ;;  %v738_v46 = vmul.f32 1.442695, %v716_v36 }
 0x23c   :  { %810 = vadd.xlane.f32.xlu1 %v1431_v33  ;;  %v703_v8 = vpop.permute.xlu1 %702 }
 0x23d   :  { %v724_v3 = vsub.f32 %v2041_v12, %v703_v8 }
 0x23f   :  { %v1433_v62 = vpop.eup %1432  ;;  %v754_v47 = vmul.f32 1.442695, %v724_v3 }
 0x240   :  { %790 = vadd.xlane.f32.xlu0 %v1433_v62  ;;  %v653_v30 = vpop.permute.xlu1 %652 }
 0x241   :  { %v714_v34 = vsub.f32 %v2087_v26, %v653_v30 }
 0x243   :  { %v1435_v60 = vpop.eup %1434  ;;  %v734_v10 = vmul.f32 1.442695, %v714_v34 }
 0x244   :  { %806 = vadd.xlane.f32.xlu1 %v1435_v60  ;;  %v693_v43 = vpop.permute.xlu1 %692  ;;  %v977_v60 = vld [vmem:[#allocation5 + $0x50] sm:$0xff] }
 0x245   :  { %v722_v12 = vsub.f32 %v2120_v35, %v693_v43  ;;  %v871_v43 = vld [vmem:[#allocation4] sm:$0xff] }
 0x25b   :  { %v1046_v38 = vpop.xlane.xlu0 %1045 }
 0x25c   :  { %v1062_v56 = vadd.f32 %v1046_v38, %v982_v18 }
 0x25e   :  { %1078 = vst.msk [vmem:[#allocation5 + $0x78] sm:$0xff] %vm2892_vm8, %v1062_v56  ;;  %v750_v56 = vmul.f32 1.442695, %v722_v12  ;;  %vm2900_vm8 = vmmov %vm2896_vm0  ;;  %v877_v12 = vld [vmem:[#allocation4 + $0x30] sm:$0xff] }
 0x25f   :  { %v906_v19 = vpop.xlane.xlu0 %905 }
 0x260   :  { %v936_v52 = vadd.f32 %v906_v19, %v872_v55 }
 0x262   :  { %952 = vst.msk [vmem:[#allocation4 + $0x8] sm:$0xff] %vm2893_vm7, %v936_v52  ;;  %v979_v52 = vld [vmem:[#allocation5 + $0x60] sm:$0xff]  ;;  %vm2901_vm7 = vmmov %vm2896_vm0 }
 0x263   :  { %v910_v24 = vpop.xlane.xlu0 %909 }
 0x264   :  { %v938_v45 = vadd.f32 %v910_v24, %v874_v25 }
 0x266   :  { %954 = vst.msk [vmem:[#allocation4 + $0x18] sm:$0xff] %vm2894_vm12, %v938_v45  ;;  %vm2902_vm12 = vmmov %vm2896_vm0 }
 0x267   :  { %v914_v22 = vpop.xlane.xlu0 %913 }
 0x268   :  { %v940_v11 = vadd.f32 %v914_v22, %v876_v54  ;;  %v981_v22 = vld [vmem:[#allocation5 + $0x70] sm:$0xff] }
 0x26a   :  { %956 = vst.msk [vmem:[#allocation4 + $0x28] sm:$0xff] %vm2895_vm2, %v940_v11  ;;  %vm2903_vm2 = vmmov %vm2896_vm0 }
 0x26f   :  { %v638_v0 = vpop.permute.xlu0 %637 }
 0x270   :  { %v711_v37 = vsub.f32 %v1984_v53, %v638_v0  ;;  %v975_v53 = vld [vmem:[#allocation5 + $0x40] sm:$0xff] }
 0x272   :  { %v728_v13 = vmul.f32 1.442695, %v711_v37 }
 0x273   :  { %v648_v5 = vpop.permute.xlu0 %647 }
 0x274   :  { %1436 = vpow2.f32 %v728_v13  ;;  %v713_v57 = vsub.f32 %v1979_v50, %v648_v5 }
 0x275   :  { %1438 = vpow2.f32 %v738_v46 }
 0x276   :  { %v732_v32 = vmul.f32 1.442695, %v713_v57  ;;  %v1028_v63 = vpop.xlane.xlu1 %1027 }
 0x277   :  { %v1053_v9 = vadd.f32 %v1028_v63, %v973_v4  ;;  %v678_v58 = vpop.permute.xlu0 %677 }
 0x278   :  { %1440 = vpow2.f32 %v732_v32  ;;  %v719_v50 = vsub.f32 %v2059_v39, %v678_v58  ;;  %v873_v32 = vld [vmem:[#allocation4 + $0x10] sm:$0xff] }
 0x279   :  { %1069 = vst.msk [vmem:[#allocation5 + $0x30] sm:$0xff] %vm2896_vm0, %v1053_v9  ;;  %1442 = vpow2.f32 %v754_v47  ;;  %v875_v47 = vld [vmem:[#allocation4 + $0x20] sm:$0xff] }
 0x27a   :  { %v1032_v17 = vpop.xlane.xlu1 %1031  ;;  %1444 = vpow2.f32 %v734_v10  ;;  %v744_v48 = vmul.f32 1.442695, %v719_v50  ;;  %v897_v50 = vsel %vm2405_vm6, %v1898_v6, 0.0  ;;  %v2904_v6 = vld [vmem:[#allocation7_spill] sm:$0xff] }
 0x27b   :  { %v1055_v7 = vadd.f32 %v1032_v17, %v975_v53  ;;  %v688_v33 = vpop.permute.xlu0 %687 }
 0x27c   :  { %v721_v62 = vsub.f32 %v2030_v61, %v688_v33 }
 0x27d   :  { %1071 = vst.msk [vmem:[#allocation5 + $0x40] sm:$0xff] %vm2897_vm13, %v1055_v7  ;;  %vm2930_vm13 = vmmov %vm2896_vm0 }
 0x27e   :  { %v1437_v26 = vpop.eup %1436  ;;  %v748_v18 = vmul.f32 1.442695, %v721_v62  ;;  %v1036_v38 = vpop.xlane.xlu1 %1035 }
 0x27f   :  { %v1057_v55 = vadd.f32 %v1036_v38, %v977_v60  ;;  %792 = vadd.xlane.f32.xlu1 %v1437_v26  ;;  %v668_v19 = vpop.permute.xlu0 %667  ;;  %v1439_v25 = vpop.eup %1438  ;;  %v901_v26 = vsel %vm2427_vm3, %v1999_v42, 0.0  ;;  %v2906_v38 = vld [vmem:[#allocation6_spill] sm:$0xff] }
 0x280   :  { %1446 = vpow2.f32 %v748_v18  ;;  %v717_v35 = vsub.f32 %v2115_v28, %v668_v19  ;;  %v896_v18 = vsel %vm2180_vm10, %v2904_v6, 0.0  ;;  %vm2921_vm10 = vmmov %vm2896_vm0 }
 0x281   :  { %1073 = vst.msk [vmem:[#allocation5 + $0x50] sm:$0xff] %vm2898_vm1, %v1057_v55  ;;  %1448 = vpow2.f32 %v750_v56  ;;  %v898_v55 = vsel %vm2194_vm14, %v2906_v38, 0.0  ;;  %vm2925_vm14 = vmmov %vm2896_vm0 }
 0x282   :  { %v1441_v61 = vpop.eup %1440  ;;  %v1040_v39 = vpop.xlane.xlu1 %1039  ;;  %1450 = vpow2.f32 %v744_v48  ;;  %v740_v54 = vmul.f32 1.442695, %v717_v35  ;;  %v2910_v48 = vld [vmem:[#allocation8_spill] sm:$0xff]  ;;  %v2912_v35 = vld [vmem:[#allocation14_spill] sm:$0xff]  ;;  %vm2951_vm1 = vmmov %vm2896_vm0 }
 0x283   :  { %v1059_v24 = vadd.f32 %v1040_v39, %v979_v52  ;;  %802 = vadd.xlane.f32.xlu1 %v1439_v25  ;;  %796 = vadd.xlane.f32.xlu0 %v1441_v61  ;;  %v708_v45 = vpop.permute.xlu0 %707  ;;  %v1443_v11 = vpop.eup %1442  ;;  %v902_v42 = vsel %vm2363_vm15, %v2910_v48, 0.0  ;;  %v2913_v52 = vld [vmem:[#allocation16_spill] sm:$0xff]  ;;  %v878_v39 = vld [vmem:[#allocation4 + $0x38] sm:$0xff]  ;;  %vm2927_vm15 = vmmov %vm2896_vm0 }
 0x284   :  { %v725_v8 = vsub.f32 %v2136_v40, %v708_v45  ;;  %1452 = vpow2.f32 %v740_v54  ;;  %v1445_v13 = vpop.eup %1444  ;;  %v2914_v25 = vsub.f32 %v2912_v35, %v2913_v52  ;;  %v2916_v45 = vld [vmem:[#allocation15_spill] sm:$0xff] }
 0x285   :  { %1075 = vst.msk [vmem:[#allocation5 + $0x60] sm:$0xff] %vm2899_vm9, %v1059_v24  ;;  %v2915_v24 = vld [vmem:[#allocation13_spill] sm:$0xff]  ;;  %vm2956_vm9 = vmmov %vm2896_vm0 }
 0x286   :  { %v1044_v28 = vpop.xlane.xlu1 %1043  ;;  %v756_v0 = vmul.f32 1.442695, %v725_v8  ;;  %v602_v61 = vmul.f32 1.442695, %v2914_v25  ;;  %v2917_v54 = vsub.f32 %v2915_v24, %v2916_v45  ;;  %v1082_v25 = vld [vmem:[#allocation2] sm:$0xff] }
 0x287   :  { %v1061_v30 = vadd.f32 %v1044_v28, %v981_v22  ;;  %818 = vadd.xlane.f32.xlu1 %v1443_v11  ;;  %v658_v36 = vpop.permute.xlu0 %657  ;;  %v2918_v28 = vld [vmem:[#allocation18_spill] sm:$0xff] }
 0x288   :  { %v715_v37 = vsub.f32 %v2143_v59, %v658_v36  ;;  %1454 = vpow2.f32 %v756_v0  ;;  %v618_v8 = vmul.f32 1.442695, %v2917_v54  ;;  %v2931_v54 = vld [vmem:[#allocation22_spill] sm:$0xff] }
 0x289   :  { %1077 = vst.msk [vmem:[#allocation5 + $0x70] sm:$0xff] %vm2900_vm8, %v1061_v30  ;;  %v2919_v30 = vld [vmem:[#allocation20_spill] sm:$0xff]  ;;  %vm2957_vm8 = vmmov %vm2896_vm0 }
 0x28a   :  { %v1447_v46 = vpop.eup %1446  ;;  %v904_v5 = vpop.xlane.xlu1 %903  ;;  %v736_v57 = vmul.f32 1.442695, %v715_v37  ;;  %v2920_v36 = vsub.f32 %v2918_v28, %v2919_v30  ;;  %v2922_v37 = vld [vmem:[#allocation17_spill] sm:$0xff] }
 0x28b   :  { %v935_v3 = vadd.f32 %v904_v5, %v871_v43  ;;  %798 = vadd.xlane.f32.xlu1 %v1445_v13  ;;  %812 = vadd.xlane.f32.xlu0 %v1447_v46  ;;  %v698_v40 = vpop.permute.xlu0 %697  ;;  %v1449_v63 = vpop.eup %1448  ;;  %v2923_v43 = vld [vmem:[#allocation19_spill] sm:$0xff] }
 0x28c   :  { %v723_v4 = vsub.f32 %v2161_v15, %v698_v40  ;;  %v1451_v34 = vpop.eup %1450  ;;  %1456 = vpow2.f32 %v736_v57  ;;  %v895_v15 = vsel %vm2394_vm5, %v1910_v14, 0.0  ;;  %v899_v14 = vsel %vm2416_vm11, %v2079_v20, 0.0  ;;  %v2908_v20 = vld [vmem:[#allocation9_spill] sm:$0xff]  ;;  %vm2928_vm5 = vmmov %vm2896_vm0 }
 0x28d   :  { %951 = vst.msk [vmem:[#allocation4] sm:$0xff] %vm2901_vm7, %v935_v3  ;;  %v900_v19 = vsel %vm2208_vm4, %v2908_v20, 0.0  ;;  %v598_v0 = vmul.f32 1.442695, %v2920_v36  ;;  %v2924_v13 = vsub.f32 %v2922_v37, %v2923_v43  ;;  %v760_v3 = vld [vmem:[#allocation3 + $0x10] sm:$0xff]  ;;  %vm2926_vm4 = vmmov %vm2896_vm0  ;;  %v2934_v36 = vld [vmem:[#allocation23_spill] sm:$0xff] }
 0x28e   :  { %v908_v59 = vpop.xlane.xlu1 %907  ;;  %v752_v58 = vmul.f32 1.442695, %v723_v4  ;;  %v1453_v53 = vpop.eup %1452  ;;  %vm2929_vm11 = vmmov %vm2896_vm0 }
 0x28f   :  { %v937_v9 = vadd.f32 %v908_v59, %v873_v32  ;;  %814 = vadd.xlane.f32.xlu1 %v1449_v63  ;;  %808 = vadd.xlane.f32.xlu0 %v1451_v34  ;;  %v614_v46 = vmul.f32 1.442695, %v2924_v13  ;;  %v768_v32 = vld [vmem:[#allocation3 + $0x50] sm:$0xff]  ;;  %vm2960_vm7 = vmmov %vm2896_vm0 }
 0x290   :  { %1458 = vpow2.f32 %v752_v58  ;;  %v758_v58 = vld [vmem:[#allocation3] sm:$0xff]  ;;  %v2937_v13 = vld [vmem:[#allocation24_spill] sm:$0xff] }
 0x291   :  { %953 = vst.msk [vmem:[#allocation4 + $0x10] sm:$0xff] %vm2902_vm12, %v937_v9  ;;  %1460 = vpow2.f32 %v602_v61  ;;  %vm2961_vm12 = vmmov %vm2896_vm0 }
 0x292   :  { %v912_v17 = vpop.xlane.xlu1 %911  ;;  %v1455_v7 = vpop.eup %1454  ;;  %1462 = vpow2.f32 %v618_v8  ;;  %v585_v8 = vsub.f32 %v2931_v54, %v2261_v51 }
 0x293   :  { %v939_v10 = vadd.f32 %v912_v17, %v875_v47  ;;  %919 = vadd.xlane.f32.xlu1 %v895_v15  ;;  %804 = vadd.xlane.f32.xlu0 %v1453_v53  ;;  %1464 = vpow2.f32 %v598_v0  ;;  %v1164_v53 = vld [vmem:[#allocation5 + $0x10] sm:$0xff]  ;;  %v2935_v0 = vld [vmem:[#allocation25_spill] sm:$0xff] }
 0x294   :  { %1466 = vpow2.f32 %v614_v46  ;;  %vm1244_vm6 = vcmp.gt.f32.partialorder %v1164_v53, 0.0  ;;  %v604_v30 = vmul.f32 1.442695, %v585_v8  ;;  %v2936_v37 = vsub.f32 %v2934_v36, %v2935_v0  ;;  %v2577_v0 = vld [vmem:[#allocation5 + $0x18] sm:$0xff] }
 0x295   :  { %955 = vst.msk [vmem:[#allocation4 + $0x20] sm:$0xff] %vm2903_vm2, %v939_v10  ;;  %v593_v46 = vsub.f32 %v2937_v13, %v2278_v44  ;;  %v2946_v44 = vld [vmem:[#allocation31_spill] sm:$0xff]  ;;  %vm2962_vm2 = vmmov %vm2896_vm0 }
 0x296   :  { %v916_v33 = vpop.xlane.xlu1 %915  ;;  %v1457_v29 = vpop.eup %1456  ;;  %v610_v43 = vmul.f32 1.442695, %v2936_v37 }
 0x297   :  { %v941_v62 = vadd.f32 %v916_v33, %v877_v12  ;;  %923 = vadd.xlane.f32.xlu1 %v897_v50  ;;  %820 = vadd.xlane.f32.xlu0 %v1455_v7  ;;  %v766_v12 = vld [vmem:[#allocation3 + $0x40] sm:$0xff]  ;;  %v1196_v7 = vmax.f32 %v1164_v53, 1.0  ;;  %v620_v51 = vmul.f32 1.442695, %v593_v46  ;;  %v2947_v53 = vld [vmem:[#allocation33_spill] sm:$0xff] }
 0x299   :  { %957 = vst.msk [vmem:[#allocation4 + $0x30] sm:$0xff] %vm2896_vm0, %v941_v62 }
 0x29a   :  { %v1459_v60 = vpop.eup %1458 }
 0x29b   :  { %927 = vadd.xlane.f32.xlu1 %v899_v14  ;;  %800 = vadd.xlane.f32.xlu0 %v1457_v29  ;;  %v1461_v5 = vpop.eup %1460 }
 0x29c   :  { %v776_v40 = vmul.f32 %v1461_v5, %v760_v3  ;;  %v1463_v57 = vpop.eup %1462  ;;  %v2938_v5 = vld [vmem:[#allocation26_spill] sm:$0xff]  ;;  %v2939_v3 = vld [vmem:[#allocation28_spill] sm:$0xff] }
 0x29d   :  { %v784_v34 = vmul.f32 %v1463_v57, %v768_v32  ;;  %v1465_v59 = vpop.eup %1464 }
 0x29e   :  { %v774_v17 = vmul.f32 %v1465_v59, %v758_v58  ;;  %v1467_v15 = vpop.eup %1466  ;;  %v759_v59 = vld [vmem:[#allocation3 + $0x8] sm:$0xff] }
 0x29f   :  { %931 = vadd.xlane.f32.xlu1 %v901_v26  ;;  %816 = vadd.xlane.f32.xlu0 %v1459_v60  ;;  %v782_v62 = vmul.f32 %v1467_v15, %v766_v12  ;;  %v1162_v60 = vld [vmem:[#allocation5] sm:$0xff] }
 0x2a0   :  { %v1194_v26 = vmax.f32 %v1162_v60, 1.0  ;;  %vm1242_vm3 = vcmp.gt.f32.partialorder %v1162_v60, 0.0  ;;  %v2949_v60 = vld [vmem:[#allocation32_spill] sm:$0xff] }
 0x2a3   :  { %921 = vadd.xlane.f32.xlu0 %v896_v18  ;;  %v1180_v18 = vld [vmem:[#allocation4 + $0x10] sm:$0xff] }
 0x2a7   :  { %925 = vadd.xlane.f32.xlu0 %v898_v55  ;;  %v1084_v55 = vld [vmem:[#allocation2 + $0x10] sm:$0xff] }
 0x2ab   :  { %929 = vadd.xlane.f32.xlu0 %v900_v19 }
 0x2af   :  { %933 = vadd.xlane.f32.xlu0 %v902_v42  ;;  %v1178_v42 = vld [vmem:[#allocation4] sm:$0xff] }
 0x2b8   :  { %v918_v22 = vpop.xlane.xlu0 %917 }
 0x2b9   :  { %v942_v11 = vadd.f32 %v918_v22, %v878_v39  ;;  %v2932_v22 = vld [vmem:[#allocation21_spill] sm:$0xff] }
 0x2bb   :  { %958 = vst.msk [vmem:[#allocation4 + $0x38] sm:$0xff] %vm2921_vm10, %v942_v11  ;;  %v2933_v11 = vsub.f32 %v2932_v22, %v2258_v31  ;;  %v2942_v31 = vld [vmem:[#allocation30_spill] sm:$0xff]  ;;  %vm2963_vm10 = vmmov %vm2896_vm0 }
 0x2bc   :  { %v762_v22 = vld [vmem:[#allocation3 + $0x20] sm:$0xff] }
 0x2bd   :  { %v600_v28 = vmul.f32 1.442695, %v2933_v11  ;;  %v769_v11 = vld [vmem:[#allocation3 + $0x58] sm:$0xff] }
 0x2c5   :  { %v795_v4 = vpop.xlane.xlu0 %794 }
 0x2c6   :  { %v824_v63 = vadd.f32 %v795_v4, %v776_v40  ;;  %v2940_v40 = vsub.f32 %v2938_v5, %v2939_v3  ;;  %v2941_v4 = vld [vmem:[#allocation29_spill] sm:$0xff]  ;;  %v770_v3 = vld [vmem:[#allocation3 + $0x60] sm:$0xff] }
 0x2c7   :  { %v2943_v32 = vsub.f32 %v2941_v4, %v2942_v31 }
 0x2c8   :  { %841 = vst.msk [vmem:[#allocation3 + $0x10] sm:$0xff] %vm2925_vm14, %v824_v63  ;;  %v626_v57 = vmul.f32 1.442695, %v2940_v40  ;;  %v767_v40 = vld [vmem:[#allocation3 + $0x48] sm:$0xff]  ;;  %vm2964_vm14 = vmmov %vm2896_vm0 }
 0x2c9   :  { %v811_v9 = vpop.xlane.xlu1 %810  ;;  %v606_v63 = vmul.f32 1.442695, %v2943_v32  ;;  %v1197_v32 = vmax.f32 %v2577_v0, 1.0 }
 0x2ca   :  { %v832_v47 = vadd.f32 %v811_v9, %v784_v34  ;;  %v2944_v9 = vld [vmem:[#allocation27_spill] sm:$0xff] }
 0x2cb   :  { %v2945_v58 = vsub.f32 %v2944_v9, %v2295_v2  ;;  %v2950_v2 = vsub.f32 %v2949_v60, %v2325_v49  ;;  %v2585_v9 = vld [vmem:[#allocation5 + $0x38] sm:$0xff]  ;;  %v2594_v60 = vld [vmem:[#allocation5 + $0x60] sm:$0xff] }
 0x2cc   :  { %849 = vst.msk [vmem:[#allocation3 + $0x50] sm:$0xff] %vm2926_vm4, %v832_v47  ;;  %vm2965_vm4 = vmmov %vm2896_vm0 }
 0x2cd   :  { %v791_v10 = vpop.xlane.xlu0 %790  ;;  %v616_v47 = vmul.f32 1.442695, %v2945_v58 }
 0x2ce   :  { %v822_v33 = vadd.f32 %v791_v10, %v774_v17  ;;  %v2948_v17 = vsub.f32 %v2946_v44, %v2947_v53 }
 0x2cf   :  { %v1100_v50 = vld [vmem:[#allocation3 + $0x10] sm:$0xff] }
 0x2d0   :  { %1468 = vlog2.f32 %v1100_v50  ;;  %839 = vst.msk [vmem:[#allocation3] sm:$0xff] %vm2927_vm15, %v822_v33  ;;  %v622_v15 = vmul.f32 1.442695, %v2948_v17  ;;  %v764_v50 = vld [vmem:[#allocation3 + $0x30] sm:$0xff] }
 0x2d1   :  { %v807_v29 = vpop.xlane.xlu1 %806  ;;  %1470 = vrcp.f32 %v1196_v7 }
 0x2d2   :  { %v830_v14 = vadd.f32 %v807_v29, %v782_v62  ;;  %v761_v62 = vld [vmem:[#allocation3 + $0x18] sm:$0xff]  ;;  %v2556_v29 = vld [vmem:[#allocation5 + $0x8] sm:$0xff] }
 0x2d3   :  { %vm1243_vm15 = vcmp.gt.f32.partialorder %v2556_v29, 0.0 }
 0x2d4   :  { %847 = vst.msk [vmem:[#allocation3 + $0x40] sm:$0xff] %vm2928_vm5, %v830_v14  ;;  %vm1245_vm5 = vcmp.gt.f32.partialorder %v2577_v0, 0.0  ;;  %v1086_v0 = vld [vmem:[#allocation2 + $0x20] sm:$0xff] }
 0x2d7   :  { %v1098_v6 = vld [vmem:[#allocation3] sm:$0xff] }
 0x2d8   :  { %1472 = vlog2.f32 %v1098_v6 }
 0x2d9   :  { %1474 = vrcp.f32 %v1194_v26  ;;  %v612_v26 = vmul.f32 1.442695, %v2950_v2  ;;  %v879_v2 = vld [vmem:[#allocation4 + $0x40] sm:$0xff] }
 0x2da   :  { %v1469_v1 = vpop.eup %1468  ;;  %1476 = vpow2.f32 %v600_v28 }
 0x2db   :  { %v1119_v38 = vmul.f32 0.6931472, %v1469_v1  ;;  %v1471_v56 = vpop.eup %1470  ;;  %1478 = vpow2.f32 %v604_v30  ;;  %v1106_v37 = vld [vmem:[#allocation3 + $0x40] sm:$0xff] }
 0x2dc   :  { %v1215_v20 = vmul.f32 %v1471_v56, %v1180_v18  ;;  %1480 = vpow2.f32 %v610_v43 }
 0x2dd   :  { %v1148_v21 = vadd.f32 %v1119_v38, %v1084_v55  ;;  %1482 = vpow2.f32 %v626_v57  ;;  %v1195_v38 = vmax.f32 %v2556_v29, 1.0  ;;  %v2580_v57 = vld [vmem:[#allocation5 + $0x20] sm:$0xff] }
 0x2de   :  { %1484 = vpow2.f32 %v620_v51  ;;  %v2582_v51 = vld [vmem:[#allocation5 + $0x40] sm:$0xff] }
 0x2df   :  { %v1260_v19 = vsub.f32 %v1215_v20, %v1148_v21  ;;  %1486 = vpow2.f32 %v606_v63  ;;  %v772_v20 = vld [vmem:[#allocation3 + $0x70] sm:$0xff]  ;;  %v2952_v21 = vld [vmem:[#allocation34_spill] sm:$0xff]  ;;  %v1202_v53 = vmax.f32 %v2582_v51, 1.0 }
 0x2e0   :  { %1488 = vpow2.f32 %v616_v47  ;;  %v1108_v63 = vld [vmem:[#allocation3 + $0x50] sm:$0xff] }
 0x2e1   :  { %v1276_v48 = vsel %vm1244_vm6, %v1260_v19, 0.0  ;;  %1490 = vpow2.f32 %v622_v15  ;;  %v2953_v19 = vsub.f32 %v2952_v21, %v2339_v16  ;;  %v1179_v21 = vld [vmem:[#allocation4 + $0x8] sm:$0xff]  ;;  %vm2966_vm6 = vmmov %vm2896_vm0 }
 0x2e2   :  { %v1473_v41 = vpop.eup %1472  ;;  %1292 = vst.msk [vmem:[%s2717_s4 + $0x10] sm:$0xff] %vm2929_vm11, %v1276_v48  ;;  %1492 = vpow2.f32 %v612_v26  ;;  %vm2967_vm11 = vmmov %vm2896_vm0 }
 0x2e3   :  { %v1115_v35 = vmul.f32 0.6931472, %v1473_v41  ;;  %v1475_v52 = vpop.eup %1474  ;;  %v628_v48 = vmul.f32 1.442695, %v2953_v19  ;;  %1494 = vrcp.f32 %v1195_v38  ;;  %v1206_v19 = vmax.f32 %v2594_v60, 1.0 }
 0x2e4   :  { %v1211_v61 = vmul.f32 %v1475_v52, %v1178_v42  ;;  %v1477_v34 = vpop.eup %1476 }
 0x2e5   :  { %v1146_v39 = vadd.f32 %v1115_v35, %v1082_v25  ;;  %v1479_v10 = vpop.eup %1478  ;;  %v775_v12 = vmul.f32 %v1477_v34, %v759_v59  ;;  %v2954_v35 = vld [vmem:[#allocation35_spill] sm:$0xff]  ;;  %v2569_v25 = vld [vmem:[#allocation5 + $0x30] sm:$0xff]  ;;  %1496 = vpow2.f32 %v628_v48 }
 0x2e6   :  { %v1481_v7 = vpop.eup %1480  ;;  %v777_v1 = vmul.f32 %v1479_v10, %v761_v62  ;;  %v2955_v49 = vsub.f32 %v2954_v35, %v2349_v27  ;;  %v1200_v27 = vmax.f32 %v2569_v25, 1.0  ;;  %v765_v10 = vld [vmem:[#allocation3 + $0x38] sm:$0xff] }
 0x2e7   :  { %v1258_v24 = vsub.f32 %v1211_v61, %v1146_v39  ;;  %v780_v6 = vmul.f32 %v1481_v7, %v764_v50  ;;  %v1483_v18 = vpop.eup %1482  ;;  %v2591_v7 = vld [vmem:[#allocation5 + $0x50] sm:$0xff] }
 0x2e8   :  { %v608_v52 = vmul.f32 1.442695, %v2955_v49  ;;  %v1485_v61 = vpop.eup %1484  ;;  %v788_v39 = vmul.f32 %v1483_v18, %v772_v20  ;;  %v1204_v18 = vmax.f32 %v2591_v7, 1.0 }
 0x2e9   :  { %v1274_v45 = vsel %vm1242_vm3, %v1258_v24, 0.0  ;;  %v1487_v24 = vpop.eup %1486  ;;  %v785_v13 = vmul.f32 %v1485_v61, %v769_v11  ;;  %vm2968_vm3 = vmmov %vm2896_vm0 }
 0x2ea   :  { %1290 = vst.msk [vmem:[%s2717_s4] sm:$0xff] %vm2930_vm13, %v1274_v45  ;;  %v2958_v45 = vld [vmem:[#allocation36_spill] sm:$0xff]  ;;  %1498 = vpow2.f32 %v608_v52  ;;  %v1489_v36 = vpop.eup %1488  ;;  %v778_v43 = vmul.f32 %v1487_v24, %v762_v22  ;;  %vm1248_vm13 = vcmp.gt.f32.partialorder %v2569_v25, 0.0 }
 0x2eb   :  { %v2959_v16 = vsub.f32 %v2958_v45, %v2359_v23  ;;  %v1491_v23 = vpop.eup %1490  ;;  %v783_v47 = vmul.f32 %v1489_v36, %v767_v40  ;;  %v881_v52 = vld [vmem:[#allocation4 + $0x50] sm:$0xff] }
 0x2ec   :  { %v786_v58 = vmul.f32 %v1491_v23, %v770_v3  ;;  %v1493_v44 = vpop.eup %1492  ;;  %v2604_v36 = vld [vmem:[#allocation5 + $0x70] sm:$0xff] }
 0x2ed   :  { %v624_v54 = vmul.f32 1.442695, %v2959_v16  ;;  %v1495_v62 = vpop.eup %1494  ;;  %v763_v16 = vld [vmem:[#allocation3 + $0x28] sm:$0xff] }
 0x2ef   :  { %v1497_v26 = vpop.eup %1496 }
 0x30c   :  { %v793_v33 = vpop.xlane.xlu1 %792 }
 0x30d   :  { %v823_v14 = vadd.f32 %v793_v33, %v775_v12  ;;  %v1198_v12 = vmax.f32 %v2580_v57, 1.0 }
 0x30f   :  { %840 = vst.msk [vmem:[#allocation3 + $0x8] sm:$0xff] %vm2951_vm1, %v823_v14  ;;  %v1201_v14 = vmax.f32 %v2585_v9, 1.0  ;;  %vm2969_vm1 = vmmov %vm2896_vm0 }
 0x310   :  { %v803_v56 = vpop.xlane.xlu1 %802  ;;  %v797_v55 = vpop.xlane.xlu0 %796 }
 0x311   :  { %v828_v41 = vadd.f32 %v803_v56, %v780_v6  ;;  %v825_v42 = vadd.f32 %v797_v55, %v777_v1  ;;  %v781_v6 = vmul.f32 %v1493_v44, %v765_v10  ;;  %v1499_v1 = vpop.eup %1498  ;;  %v773_v55 = vld [vmem:[#allocation3 + $0x78] sm:$0xff] }
 0x312   :  { %v789_v45 = vmul.f32 %v1497_v26, %v773_v55 }
 0x313   :  { %845 = vst.msk [vmem:[#allocation3 + $0x30] sm:$0xff] %vm2956_vm9, %v828_v41  ;;  %vm2970_vm9 = vmmov %vm2896_vm0 }
 0x314   :  { %842 = vst.msk [vmem:[#allocation3 + $0x18] sm:$0xff] %vm2957_vm8, %v825_v42  ;;  %v819_v8 = vpop.xlane.xlu1 %818  ;;  %vm2971_vm8 = vmmov %vm2896_vm0 }
 0x315   :  { %v836_v28 = vadd.f32 %v819_v8, %v788_v39  ;;  %v1083_v39 = vld [vmem:[#allocation2 + $0x8] sm:$0xff]  ;;  %v1213_v8 = vmul.f32 %v1495_v62, %v1179_v21  ;;  %v1090_v62 = vld [vmem:[#allocation2 + $0x40] sm:$0xff]  ;;  %v885_v21 = vld [vmem:[#allocation4 + $0x70] sm:$0xff] }
 0x316   :  { %v1099_v30 = vld [vmem:[#allocation3 + $0x8] sm:$0xff] }
 0x317   :  { %1500 = vlog2.f32 %v1099_v30  ;;  %853 = vst.msk [vmem:[#allocation3 + $0x70] sm:$0xff] %vm2960_vm7, %v836_v28  ;;  %v771_v28 = vld [vmem:[#allocation3 + $0x68] sm:$0xff]  ;;  %vm1250_vm7 = vcmp.gt.f32.partialorder %v2582_v51, 0.0 }
 0x318   :  { %1502 = vpow2.f32 %v624_v54  ;;  %v799_v46 = vpop.xlane.xlu1 %798  ;;  %v813_v5 = vpop.xlane.xlu0 %812 }
 0x319   :  { %1504 = vrcp.f32 %v1200_v27  ;;  %v826_v4 = vadd.f32 %v799_v46, %v778_v43  ;;  %v833_v31 = vadd.f32 %v813_v5, %v785_v13  ;;  %v1181_v46 = vld [vmem:[#allocation4 + $0x18] sm:$0xff] }
 0x31a   :  { %1506 = vlog2.f32 %v1106_v37  ;;  %v1104_v34 = vld [vmem:[#allocation3 + $0x30] sm:$0xff] }
 0x31b   :  { %v1101_v59 = vld [vmem:[#allocation3 + $0x18] sm:$0xff]  ;;  %1508 = vlog2.f32 %v1104_v34  ;;  %843 = vst.msk [vmem:[#allocation3 + $0x20] sm:$0xff] %vm2961_vm12, %v826_v4  ;;  %v1184_v37 = vld [vmem:[#allocation4 + $0x30] sm:$0xff]  ;;  %v883_v4 = vld [vmem:[#allocation4 + $0x60] sm:$0xff] }
 0x31c   :  { %850 = vst.msk [vmem:[#allocation3 + $0x58] sm:$0xff] %vm2962_vm2, %v833_v31  ;;  %1510 = vlog2.f32 %v1101_v59  ;;  %v815_v17 = vpop.xlane.xlu1 %814  ;;  %v809_v15 = vpop.xlane.xlu0 %808  ;;  %v779_v31 = vmul.f32 %v1499_v1, %v763_v16  ;;  %vm2972_vm12 = vmmov %vm2896_vm0 }
 0x31d   :  { %1512 = vlog2.f32 %v1108_v63  ;;  %v834_v33 = vadd.f32 %v815_v17, %v786_v58  ;;  %v831_v50 = vadd.f32 %v809_v15, %v783_v47  ;;  %v1088_v63 = vld [vmem:[#allocation2 + $0x30] sm:$0xff]  ;;  %v1208_v17 = vmax.f32 %v2604_v36, 1.0  ;;  %vm2973_vm2 = vmmov %vm2896_vm0 }
 0x31e   :  { %1514 = vrcp.f32 %v1197_v32  ;;  %v1112_v24 = vld [vmem:[#allocation3 + $0x70] sm:$0xff] }
 0x31f   :  { %851 = vst.msk [vmem:[#allocation3 + $0x60] sm:$0xff] %vm2896_vm0, %v834_v33  ;;  %1516 = vrcp.f32 %v1202_v53  ;;  %v1085_v53 = vld [vmem:[#allocation2 + $0x18] sm:$0xff] }
 0x320   :  { %848 = vst.msk [vmem:[#allocation3 + $0x48] sm:$0xff] %vm2963_vm10, %v831_v50  ;;  %v920_v38 = vpop.xlane.xlu1 %919  ;;  %v805_v56 = vpop.xlane.xlu0 %804  ;;  %1518 = vrcp.f32 %v1198_v12  ;;  %vm2974_vm10 = vmmov %vm2896_vm0 }
 0x321   :  { %v1501_v20 = vpop.eup %1500  ;;  %v943_v48 = vadd.f32 %v920_v38, %v879_v2  ;;  %v829_v41 = vadd.f32 %v805_v56, %v781_v6  ;;  %1520 = vrcp.f32 %v1201_v14  ;;  %v2611_v14 = vld [vmem:[#allocation5 + $0x28] sm:$0xff] }
 0x322   :  { %v1503_v42 = vpop.eup %1502  ;;  %v1117_v35 = vmul.f32 0.6931472, %v1501_v20  ;;  %v1102_v49 = vld [vmem:[#allocation3 + $0x20] sm:$0xff]  ;;  %v2613_v2 = vld [vmem:[#allocation5 + $0x48] sm:$0xff] }
 0x323   :  { %v1505_v61 = vpop.eup %1504  ;;  %1522 = vlog2.f32 %v1102_v49  ;;  %959 = vst.msk [vmem:[#allocation4 + $0x40] sm:$0xff] %vm2964_vm14, %v943_v48  ;;  %v787_v47 = vmul.f32 %v1503_v42, %v771_v28  ;;  %vm1246_vm14 = vcmp.gt.f32.partialorder %v2580_v57, 0.0 }
 0x324   :  { %846 = vst.msk [vmem:[#allocation3 + $0x38] sm:$0xff] %vm2965_vm4, %v829_v41  ;;  %v1507_v54 = vpop.eup %1506  ;;  %1524 = vrcp.f32 %v1204_v18  ;;  %v1147_v22 = vadd.f32 %v1117_v35, %v1083_v39  ;;  %v924_v11 = vpop.xlane.xlu1 %923  ;;  %v1223_v15 = vmul.f32 %v1505_v61, %v1184_v37  ;;  %v1109_v41 = vld [vmem:[#allocation3 + $0x58] sm:$0xff]  ;;  %v1203_v61 = vmax.f32 %v2613_v2, 1.0  ;;  %v2636_v37 = vld [vmem:[#allocation5 + $0x68] sm:$0xff] }
 0x325   :  { %v821_v27 = vpop.xlane.xlu0 %820  ;;  %v1509_v30 = vpop.eup %1508  ;;  %1526 = vrcp.f32 %v1206_v19  ;;  %v945_v43 = vadd.f32 %v924_v11, %v881_v52  ;;  %v1131_v34 = vmul.f32 0.6931472, %v1507_v54  ;;  %v1199_v52 = vmax.f32 %v2611_v14, 1.0  ;;  %v1092_v54 = vld [vmem:[#allocation2 + $0x50] sm:$0xff] }
 0x326   :  { %v837_v13 = vadd.f32 %v821_v27, %v789_v45  ;;  %v1511_v23 = vpop.eup %1510  ;;  %v1259_v5 = vsub.f32 %v1213_v8, %v1147_v22  ;;  %v1127_v3 = vmul.f32 0.6931472, %v1509_v30  ;;  %1528 = vlog2.f32 %v1112_v24  ;;  %v1110_v40 = vld [vmem:[#allocation3 + $0x60] sm:$0xff]  ;;  %v2628_v8 = vld [vmem:[#allocation5 + $0x58] sm:$0xff] }
 0x327   :  { %v1513_v32 = vpop.eup %1512  ;;  %v1121_v59 = vmul.f32 0.6931472, %v1511_v23  ;;  %1530 = vlog2.f32 %v1110_v40  ;;  %v1107_v58 = vld [vmem:[#allocation3 + $0x48] sm:$0xff]  ;;  %961 = vst.msk [vmem:[#allocation4 + $0x50] sm:$0xff] %vm2966_vm6, %v945_v43  ;;  %v1154_v42 = vadd.f32 %v1131_v34, %v1090_v62  ;;  %v1182_v22 = vld [vmem:[#allocation4 + $0x20] sm:$0xff]  ;;  %v1205_v51 = vmax.f32 %v2628_v8, 1.0  ;;  %vm2977_vm6 = vmmov %vm2896_vm0 }
 0x328   :  { %854 = vst.msk [vmem:[#allocation3 + $0x78] sm:$0xff] %vm2967_vm11, %v837_v13  ;;  %v1515_v44 = vpop.eup %1514  ;;  %v1275_v10 = vsel %vm1243_vm15, %v1259_v5, 0.0  ;;  %v1152_v12 = vadd.f32 %v1127_v3, %v1088_v63  ;;  %v928_v33 = vpop.xlane.xlu1 %927  ;;  %v1135_v29 = vmul.f32 0.6931472, %v1513_v32  ;;  %1532 = vlog2.f32 %v1107_v58  ;;  %v880_v23 = vld [vmem:[#allocation4 + $0x48] sm:$0xff]  ;;  %vm2975_vm15 = vmmov %vm2896_vm0 }
 0x329   :  { %v801_v50 = vpop.xlane.xlu0 %800  ;;  %v1217_v26 = vmul.f32 %v1515_v44, %v1181_v46  ;;  %1291 = vst.msk [vmem:[%s2717_s4 + $0x8] sm:$0xff] %vm2968_vm3, %v1275_v10  ;;  %v1149_v6 = vadd.f32 %v1121_v59, %v1085_v53  ;;  %v947_v1 = vadd.f32 %v928_v33, %v883_v4  ;;  %v1517_v38 = vpop.eup %1516  ;;  %v1207_v59 = vmax.f32 %v2636_v37, 1.0  ;;  %v882_v10 = vld [vmem:[#allocation4 + $0x58] sm:$0xff]  ;;  %vm2978_vm3 = vmmov %vm2896_vm0 }
 0x32a   :  { %v827_v18 = vadd.f32 %v801_v50, %v779_v31  ;;  %v1264_v56 = vsub.f32 %v1223_v15, %v1152_v12  ;;  %v1186_v55 = vld [vmem:[#allocation4 + $0x40] sm:$0xff]  ;;  %v1519_v19 = vpop.eup %1518  ;;  %v1156_v3 = vadd.f32 %v1135_v29, %v1092_v54  ;;  %vm1252_vm4 = vcmp.gt.f32.partialorder %v2591_v7, 0.0  ;;  %v1096_v29 = vld [vmem:[#allocation2 + $0x70] sm:$0xff] }
 0x32b   :  { %v1105_v20 = vld [vmem:[#allocation3 + $0x38] sm:$0xff]  ;;  %v1261_v48 = vsub.f32 %v1217_v26, %v1149_v6  ;;  %v1227_v35 = vmul.f32 %v1517_v38, %v1186_v55  ;;  %963 = vst.msk [vmem:[#allocation4 + $0x60] sm:$0xff] %vm2969_vm1, %v947_v1  ;;  %v2622_v49 = vpop.eup %1520  ;;  %v1219_v31 = vmul.f32 %v1519_v19, %v1182_v22  ;;  %v1094_v12 = vld [vmem:[#allocation2 + $0x60] sm:$0xff]  ;;  %vm1254_vm11 = vcmp.gt.f32.partialorder %v2594_v60, 0.0 }
 0x32c   :  { %1534 = vlog2.f32 %v1105_v20  ;;  %844 = vst.msk [vmem:[#allocation3 + $0x28] sm:$0xff] %vm2970_vm9, %v827_v18  ;;  %v1280_v39 = vsel %vm1248_vm13, %v1264_v56, 0.0  ;;  %v932_v24 = vpop.xlane.xlu1 %931  ;;  %v2660_v56 = vld [vmem:[#allocation5 + $0x78] sm:$0xff]  ;;  %vm2979_vm13 = vmmov %vm2896_vm0  ;;  %vm1249_vm1 = vcmp.gt.f32.partialorder %v2585_v9, 0.0  ;;  %vm1256_vm9 = vcmp.gt.f32.partialorder %v2604_v36, 0.0  ;;  %v1183_v36 = vld [vmem:[#allocation4 + $0x28] sm:$0xff] }
 0x32d   :  { %1536 = vrcp.f32 %v1208_v17  ;;  %v817_v45 = vpop.xlane.xlu0 %816  ;;  %v1523_v16 = vpop.eup %1522  ;;  %1296 = vst.msk [vmem:[%s2717_s4 + $0x30] sm:$0xff] %vm2971_vm8, %v1280_v39  ;;  %v1277_v11 = vsel %vm1245_vm5, %v1261_v48, 0.0  ;;  %v1266_v27 = vsub.f32 %v1227_v35, %v1154_v42  ;;  %v949_v28 = vadd.f32 %v932_v24, %v885_v21  ;;  %vm2976_vm5 = vmmov %vm2896_vm0  ;;  %v1185_v55 = vld [vmem:[#allocation4 + $0x38] sm:$0xff]  ;;  %v884_v42 = vld [vmem:[#allocation4 + $0x68] sm:$0xff] }
 0x32e   :  { %v835_v30 = vadd.f32 %v817_v45, %v787_v47  ;;  %v1525_v25 = vpop.eup %1524  ;;  %1293 = vst.msk [vmem:[%s2717_s4 + $0x18] sm:$0xff] %vm2972_vm12, %v1277_v11  ;;  %v1123_v43 = vmul.f32 0.6931472, %v1523_v16  ;;  %1538 = vlog2.f32 %v1109_v41  ;;  %v1188_v13 = vld [vmem:[#allocation4 + $0x50] sm:$0xff]  ;;  %v1089_v35 = vld [vmem:[#allocation2 + $0x38] sm:$0xff]  ;;  %v1209_v45 = vmax.f32 %v2660_v56, 1.0  ;;  %vm2980_vm8 = vmmov %vm2896_vm0 }
 0x32f   :  { %v1527_v46 = vpop.eup %1526  ;;  %v1282_v5 = vsel %vm1250_vm7, %v1266_v27, 0.0  ;;  %v1231_v40 = vmul.f32 %v1525_v25, %v1188_v13  ;;  %965 = vst.msk [vmem:[#allocation4 + $0x70] sm:$0xff] %vm2973_vm2, %v949_v28  ;;  %1540 = vrcp.f32 %v1203_v61  ;;  %v1113_v62 = vld [vmem:[#allocation3 + $0x78] sm:$0xff]  ;;  %v1225_v16 = vmul.f32 %v2622_v49, %v1185_v55  ;;  %v1091_v25 = vld [vmem:[#allocation2 + $0x48] sm:$0xff]  ;;  %vm2981_vm7 = vmmov %vm2896_vm0 }
 0x330   :  { %852 = vst.msk [vmem:[#allocation3 + $0x68] sm:$0xff] %vm2896_vm0, %v835_v30  ;;  %v1529_v4 = vpop.eup %1528  ;;  %v1150_v32 = vadd.f32 %v1123_v43, %v1086_v0  ;;  %1542 = vrcp.f32 %v1199_v52  ;;  %v886_v13 = vld [vmem:[#allocation4 + $0x78] sm:$0xff]  ;;  %vm2982_vm12 = vmmov %vm2896_vm0  ;;  %vm1251_vm2 = vcmp.gt.f32.partialorder %v2613_v2, 0.0 }
 0x331   :  { %1298 = vst.msk [vmem:[%s2717_s4 + $0x40] sm:$0xff] %vm2974_vm10, %v1282_v5  ;;  %v922_v63 = vpop.xlane.xlu0 %921  ;;  %v1531_v34 = vpop.eup %1530  ;;  %v1268_v58 = vsub.f32 %v1231_v40, %v1156_v3  ;;  %v1143_v33 = vmul.f32 0.6931472, %v1529_v4  ;;  %vm2983_vm10 = vmmov %vm2896_vm0 }
 0x332   :  { %v944_v47 = vadd.f32 %v922_v63, %v880_v23  ;;  %v1262_v44 = vsub.f32 %v1219_v31, %v1150_v32  ;;  %v1139_v53 = vmul.f32 0.6931472, %v1531_v34  ;;  %v1190_v17 = vld [vmem:[#allocation4 + $0x60] sm:$0xff]  ;;  %v1533_v6 = vpop.eup %1532  ;;  %v1093_v32 = vld [vmem:[#allocation2 + $0x58] sm:$0xff] }
 0x333   :  { %v1103_v15 = vld [vmem:[#allocation3 + $0x28] sm:$0xff]  ;;  %v1284_v50 = vsel %vm1252_vm4, %v1268_v58, 0.0  ;;  %v1235_v26 = vmul.f32 %v1527_v46, %v1190_v17  ;;  %v1133_v52 = vmul.f32 0.6931472, %v1533_v6  ;;  %v1160_v61 = vadd.f32 %v1143_v33, %v1096_v29  ;;  %v1097_v29 = vld [vmem:[#allocation2 + $0x78] sm:$0xff] }
 0x334   :  { %1544 = vlog2.f32 %v1103_v15  ;;  %960 = vst.msk [vmem:[#allocation4 + $0x48] sm:$0xff] %vm2975_vm15, %v944_v47  ;;  %v1278_v1 = vsel %vm1246_vm14, %v1262_v44, 0.0  ;;  %v1158_v7 = vadd.f32 %v1139_v53, %v1094_v12  ;;  %v1087_v58 = vld [vmem:[#allocation2 + $0x28] sm:$0xff]  ;;  %vm1253_vm14 = vcmp.gt.f32.partialorder %v2628_v8, 0.0  ;;  %vm2984_vm15 = vmmov %vm2896_vm0 }
 0x335   :  { %1546 = vrcp.f32 %v1205_v51  ;;  %1300 = vst.msk [vmem:[%s2717_s4 + $0x50] sm:$0xff] %vm2976_vm5, %v1284_v50  ;;  %v926_v18 = vpop.xlane.xlu0 %925  ;;  %v1155_v46 = vadd.f32 %v1133_v52, %v1091_v25  ;;  %vm1247_vm4 = vcmp.gt.f32.partialorder %v2611_v14, 0.0  ;;  %vm2985_vm5 = vmmov %vm2896_vm0 }
 0x336   :  { %v1535_v38 = vpop.eup %1534  ;;  %1548 = vrcp.f32 %v1207_v59  ;;  %1294 = vst.msk [vmem:[%s2717_s4 + $0x20] sm:$0xff] %vm2977_vm6, %v1278_v1  ;;  %v946_v57 = vadd.f32 %v926_v18, %v882_v10  ;;  %v1270_v19 = vsub.f32 %v1235_v26, %v1158_v7  ;;  %v1192_v48 = vld [vmem:[#allocation4 + $0x70] sm:$0xff]  ;;  %v1095_v26 = vld [vmem:[#allocation2 + $0x68] sm:$0xff]  ;;  %vm1255_vm6 = vcmp.gt.f32.partialorder %v2636_v37, 0.0 }
 0x337   :  { %v1537_v20 = vpop.eup %1536  ;;  %v1129_v21 = vmul.f32 0.6931472, %v1535_v38  ;;  %1550 = vlog2.f32 %v1113_v62  ;;  %v1111_v41 = vld [vmem:[#allocation3 + $0x68] sm:$0xff] }
 0x338   :  { %v1239_v39 = vmul.f32 %v1537_v20, %v1192_v48  ;;  %1552 = vlog2.f32 %v1111_v41  ;;  %962 = vst.msk [vmem:[#allocation4 + $0x58] sm:$0xff] %vm2978_vm3, %v946_v57  ;;  %v1539_v24 = vpop.eup %1538  ;;  %v1286_v22 = vsel %vm1254_vm11, %v1270_v19, 0.0  ;;  %vm2986_vm11 = vmmov %vm2896_vm0  ;;  %vm1257_vm3 = vcmp.gt.f32.partialorder %v2660_v56, 0.0 }
 0x339   :  { %v1153_v54 = vadd.f32 %v1129_v21, %v1089_v35  ;;  %v930_v11 = vpop.xlane.xlu0 %929  ;;  %1302 = vst.msk [vmem:[%s2717_s4 + $0x60] sm:$0xff] %vm2979_vm13, %v1286_v22  ;;  %v1541_v30 = vpop.eup %1540  ;;  %v1137_v23 = vmul.f32 0.6931472, %v1539_v24  ;;  %1554 = vrcp.f32 %v1209_v45  ;;  %vm2987_vm13 = vmmov %vm2896_vm0 }
 0x33a   :  { %v1272_v27 = vsub.f32 %v1239_v39, %v1160_v61  ;;  %v948_v28 = vadd.f32 %v930_v11, %v884_v42  ;;  %v1543_v5 = vpop.eup %1542 }
 0x33b   :  { %v1265_v43 = vsub.f32 %v1225_v16, %v1153_v54  ;;  %v1187_v49 = vld [vmem:[#allocation4 + $0x48] sm:$0xff]  ;;  %v1157_v44 = vadd.f32 %v1137_v23, %v1093_v32  ;;  %v1221_v15 = vmul.f32 %v1543_v5, %v1183_v36 }
 0x33c   :  { %v1288_v60 = vsel %vm1256_vm9, %v1272_v27, 0.0  ;;  %v1229_v0 = vmul.f32 %v1541_v30, %v1187_v49  ;;  %964 = vst.msk [vmem:[#allocation4 + $0x68] sm:$0xff] %vm2980_vm8, %v948_v28 }
 0x33d   :  { %v1281_v3 = vsel %vm1249_vm1, %v1265_v43, 0.0  ;;  %1304 = vst.msk [vmem:[%s2717_s4 + $0x70] sm:$0xff] %vm2981_vm7, %v1288_v60  ;;  %v934_v9 = vpop.xlane.xlu0 %933 }
 0x33e   :  { %v1545_v40 = vpop.eup %1544  ;;  %1297 = vst.msk [vmem:[%s2717_s4 + $0x38] sm:$0xff] %vm2982_vm12, %v1281_v3  ;;  %v1267_v4 = vsub.f32 %v1229_v0, %v1155_v46  ;;  %v950_v51 = vadd.f32 %v934_v9, %v886_v13 }
 0x33f   :  { %v1547_v31 = vpop.eup %1546  ;;  %v1125_v63 = vmul.f32 0.6931472, %v1545_v40  ;;  %v1189_v34 = vld [vmem:[#allocation4 + $0x58] sm:$0xff] }
 0x340   :  { %v1549_v59 = vpop.eup %1548  ;;  %v1283_v47 = vsel %vm1251_vm2, %v1267_v4, 0.0  ;;  %v1233_v53 = vmul.f32 %v1547_v31, %v1189_v34  ;;  %966 = vst.msk [vmem:[#allocation4 + $0x78] sm:$0xff] %vm2896_vm0, %v950_v51 }
 0x341   :  { %v1551_v17 = vpop.eup %1550  ;;  %v1151_v10 = vadd.f32 %v1125_v63, %v1087_v58  ;;  %1299 = vst.msk [vmem:[%s2717_s4 + $0x48] sm:$0xff] %vm2983_vm10, %v1283_v47 }
 0x342   :  { %v1553_v12 = vpop.eup %1552  ;;  %v1269_v33 = vsub.f32 %v1233_v53, %v1157_v44  ;;  %v1145_v6 = vmul.f32 0.6931472, %v1551_v17 }
 0x343   :  { %v1263_v2 = vsub.f32 %v1221_v15, %v1151_v10  ;;  %v1141_v50 = vmul.f32 0.6931472, %v1553_v12  ;;  %v1191_v62 = vld [vmem:[#allocation4 + $0x68] sm:$0xff]  ;;  %v1555_v8 = vpop.eup %1554 }
 0x344   :  { %v1285_v1 = vsel %vm1253_vm14, %v1269_v33, 0.0  ;;  %v1237_v7 = vmul.f32 %v1549_v59, %v1191_v62  ;;  %v1161_v57 = vadd.f32 %v1145_v6, %v1097_v29 }
 0x345   :  { %v1279_v18 = vsel %vm1247_vm4, %v1263_v2, 0.0  ;;  %1301 = vst.msk [vmem:[%s2717_s4 + $0x58] sm:$0xff] %vm2984_vm15, %v1285_v1  ;;  %v1159_v38 = vadd.f32 %v1141_v50, %v1095_v26 }
 0x346   :  { %1295 = vst.msk [vmem:[%s2717_s4 + $0x28] sm:$0xff] %vm2985_vm5, %v1279_v18 }
 0x347   :  { %v1271_v55 = vsub.f32 %v1237_v7, %v1159_v38  ;;  %v1193_v14 = vld [vmem:[#allocation4 + $0x78] sm:$0xff] }
 0x348   :  { %v1241_v20 = vmul.f32 %v1555_v8, %v1193_v14 }
 0x349   :  { %v1287_v21 = vsel %vm1255_vm6, %v1271_v55, 0.0 }
 0x34a   :  { %1303 = vst.msk [vmem:[%s2717_s4 + $0x68] sm:$0xff] %vm2986_vm11, %v1287_v21  ;;  %v1273_v19 = vsub.f32 %v1241_v20, %v1161_v57 }
 0x34c   :  { %v1289_v48 = vsel %vm1257_vm3, %v1273_v19, 0.0 }
 0x34d   :  { %1305 = vst.msk [vmem:[%s2717_s4 + $0x78] sm:$0xff] %vm2987_vm13, %v1289_v48 }

</bundles_post_ra>
